<compile_context>
chip_gen: v7x
topology: tpu7x:2x2x1
jax: 0.10.0
libtpu: 0.0.40
codegen_flags: <defaults>
</compile_context>

<pallas_src>
import jax
import jax.numpy as jnp
import numpy as np
from jax import lax
from jax.experimental import pallas as pl
from jax.experimental.pallas import tpu as pltpu


# ---------------------------------------------------------------------------
# Parameter preprocessing (host-side, done ONCE when weights are created).
# ---------------------------------------------------------------------------
# For nearest-2x upsampling, output parity p and 2-tap index a collect these
# original 3x3 kernel taps along that axis.
_PHASE_TAPS = {(0, 0): (0,), (0, 1): (1, 2), (1, 0): (0, 1), (1, 1): (2,)}


def fuse_upsample_conv_params(w_oihw, bias, compute_dtype=jnp.bfloat16):
    """Fold the nearest-2x upsample into the 3x3 conv weights (off the hot path).

    conv3x3(nearest2x(x))[2r+pr, 2c+pc] only reads x[r-1..r+1, c-1..c+1]; each of
    the 4 (pr, pc) sub-pixel phases is a 2x2 conv on the ORIGINAL x whose taps
    are sums of the original 3x3 taps.  Returns
      w_taps: (9, Cin, 4*Cout) per-tap weights, phase-major on the last axis
              (zero where a phase does not use that tap), in `compute_dtype`,
      b_row : (1, 4*Cout) float32 bias tiled per phase.
    """
    w = np.asarray(w_oihw, dtype=np.float32)
    Cout, Cin, KH, KW = w.shape
    assert (KH, KW) == (3, 3)
    w_hwio = np.transpose(w, (2, 3, 1, 0))                    # (3, 3, Cin, Cout)
    w_taps = np.zeros((9, Cin, 4 * Cout), np.float32)
    for a3 in range(3):                                       # tap row in padded x
        for b3 in range(3):                                   # tap col in padded x
            for pr in range(2):                               # output row parity
                for pc in range(2):                           # output col parity
                    a, b = a3 - pr, b3 - pc
                    if a not in (0, 1) or b not in (0, 1):
                        continue
                    wp = sum(w_hwio[kh, kw]
                             for kh in _PHASE_TAPS[(pr, a)]
                             for kw in _PHASE_TAPS[(pc, b)])
                    phase = 2 * pr + pc
                    w_taps[a3 * 3 + b3, :, phase * Cout:(phase + 1) * Cout] = wp
    b_row = np.tile(np.asarray(bias, dtype=np.float32), 4).reshape(1, 4 * Cout)
    return jnp.asarray(w_taps, dtype=compute_dtype), jnp.asarray(b_row)


# ---------------------------------------------------------------------------
# Kernel bodies.
# ---------------------------------------------------------------------------
def _conv_tile(xt, w_ref, b_ref, o_ref):
    """All 4 sub-pixel phases for one zero-padded original-resolution row tile.

    xt    : (TH+2, W+2, Cin) value (streaming/compute dtype)
    w_ref : (9, Cin, 4*Cout) fused per-tap weights
    b_ref : (1, 4*Cout) float32 bias
    o_ref : (1, 1, rows, lanes) with rows*lanes == TH*W*4*Cout (row-major match)
    """
    th = xt.shape[0] - 2
    w = xt.shape[1] - 2
    cin = xt.shape[2]
    cout4 = w_ref.shape[2]

    # Per-tap accumulate: 9 static window slices, 9 MXU matmuls, one f32 acc.
    # (No lane-axis im2col concat -> no lane repacking / big VMEM temp at small C.)
    acc = jnp.zeros((th * w, cout4), jnp.float32)
    for tap in range(9):
        a, b = divmod(tap, 3)
        win = xt[a:a + th, b:b + w, :].reshape(th * w, cin)
        acc = acc + jnp.dot(win, w_ref[tap], preferred_element_type=jnp.float32)
    acc = acc + b_ref[...]                                    # bias, once

    rows, lanes = o_ref.shape[2], o_ref.shape[3]
    o_ref[0, 0] = acc.reshape(rows, lanes).astype(o_ref.dtype)


def upsample_conv_kernel(x_ref, w_ref, b_ref, o_ref):
    """Whole-height tile: input rows arrive via the auto-pipelined BlockSpec."""
    _conv_tile(x_ref[0], w_ref, b_ref, o_ref)


def upsample_conv_halo_kernel(x_hbm, w_ref, b_ref, o_ref, xbuf, sem):
    """Row-tiled variant: the overlapping (TH+2)-row halo window is DMA'd
    straight out of the padded HBM input (no wrapper-side halo copy)."""
    n = pl.program_id(0)
    h = pl.program_id(1)
    th = xbuf.shape[0] - 2
    cp = pltpu.make_async_copy(x_hbm.at[n, pl.ds(h * th, th + 2)], xbuf, sem.at[0])
    cp.start()
    cp.wait()
    _conv_tile(xbuf[...], w_ref, b_ref, o_ref)


# ---------------------------------------------------------------------------
# Wrapper: generation-aware VMEM budget, tile picker, pallas_call glue.
# ---------------------------------------------------------------------------
def _vmem_budget_bytes():
    cap = 64 << 20                      # conservative default (v7x per-core VMEM)
    try:
        cap = int(getattr(pltpu.get_tpu_info(), "vmem_capacity_bytes", cap))
    except Exception:
        pass
    return max(16 << 20, (cap * 3) // 4)   # leave headroom for Mosaic internals


def _pick_row_tile(H, W, Cin, Cout, in_bytes, out_bytes, budget):
    """Largest divisor of H whose block footprint fits the VMEM budget
    (fewest, fattest grid steps; TH == H whenever the whole image fits)."""
    for th in range(H, 0, -1):
        if H % th:
            continue
        ht = H // th
        inp = (2 if ht == 1 else 1) * (th + 2) * (W + 2) * Cin * in_bytes
        outb = 2 * th * W * 4 * Cout * out_bytes
        wgt = 2 * (9 * Cin * 4 * Cout * in_bytes) + 16 * Cout
        tmp = th * W * (4 * Cout * 4 * 2 + Cin * 4)           # f32 acc + tap window
        if inp + outb + wgt + tmp <= budget:
            return th
    return 1


def up_sample_forward(x_nchw, w_taps, b_row, *, row_tile=None, lane_dense_store=None):
    """nn.Upsample(scale_factor=2) -> nn.Conv2d(C, Cout, 3, padding=1); NCHW in/out.

    `w_taps` / `b_row` come from fuse_upsample_conv_params (weight preprocessing
    is paid once, not per forward call).  Streaming/compute dtype == w_taps.dtype.
    """
    N, C, H, W = x_nchw.shape
    if w_taps.shape[0] != 9 or w_taps.shape[1] != C:
        raise ValueError("w_taps must be (9, Cin, 4*Cout) from fuse_upsample_conv_params")
    Cout4 = int(w_taps.shape[2])
    Cout = Cout4 // 4
    out_dtype = x_nchw.dtype
    cdt = w_taps.dtype

    budget = _vmem_budget_bytes()
    if row_tile is None:
        TH = _pick_row_tile(H, W, C, Cout, jnp.dtype(cdt).itemsize,
                            jnp.dtype(out_dtype).itemsize, budget)
    else:
        TH = int(row_tile)
        if H % TH != 0:
            raise ValueError(f"row_tile={TH} must divide H={H}")
    HT = H // TH

    # Lane-dense stores when 4*Cout alone would under-fill the 128-lane store path.
    if lane_dense_store is None:
        lane_dense_store = Cout4 < 128 and (W * Cout4) % 128 == 0
    rows, lanes = (TH, W * Cout4) if lane_dense_store else (TH * W, Cout4)

    # Original-resolution input only: NCHW -> NHWC, cast to the streaming dtype,
    # 1-px zero pad (the conv halo of the UN-upsampled image).  No halo-window
    # stacking: row tiles read their overlapping windows straight from this array.
    x_pad = jnp.pad(jnp.transpose(x_nchw, (0, 2, 3, 1)).astype(cdt),
                    ((0, 0), (1, 1), (1, 1), (0, 0)))          # (N, H+2, W+2, C)

    w_spec = pl.BlockSpec((9, C, Cout4), lambda n, h: (0, 0, 0))
    b_spec = pl.BlockSpec((1, Cout4), lambda n, h: (0, 0))
    # TODO(synk): single-buffer the constant weight block (pipeline_mode=
    # pl.Buffered(1)) once verified; the VMEM budget counts it double-buffered.

    if HT == 1:
        kernel = upsample_conv_kernel
        in_specs = [pl.BlockSpec((1, H + 2, W + 2, C), lambda n, h: (n, 0, 0, 0)),
                    w_spec, b_spec]
        scratch = []
    else:
        kernel = upsample_conv_halo_kernel
        in_specs = [pl.BlockSpec(memory_space=pl.ANY), w_spec, b_spec]
        scratch = [pltpu.VMEM((TH + 2, W + 2, C), cdt),
                   pltpu.SemaphoreType.DMA((1,))]

    phased = pl.pallas_call(
        kernel,
        out_shape=jax.ShapeDtypeStruct((N, HT, rows, lanes), out_dtype),
        grid_spec=pltpu.PrefetchScalarGridSpec(
            num_scalar_prefetch=0,
            grid=(N, HT),
            in_specs=in_specs,
            out_specs=pl.BlockSpec((1, 1, rows, lanes), lambda n, h: (n, h, 0, 0)),
            scratch_shapes=scratch),
        compiler_params=pltpu.CompilerParams(
            dimension_semantics=("parallel", "parallel"),
            vmem_limit_bytes=int(budget)),
    )(x_pad, w_taps, b_row)

    # Phase un-interleave + NCHW.  phased[n, ht, ...] is row-major
    # (r, c, pr, pc, ch) regardless of the (rows, lanes) store factorization.
    # NOTE: this transpose is one extra HBM read+write of the 4x-sized output;
    # TODO(synk): fold it into the kernel (needs lane-granularity interleaves).
    out = phased.reshape(N, HT, TH, W, 2, 2, Cout)
    out = jnp.transpose(out, (0, 6, 1, 2, 4, 3, 5))            # (n, ch, ht, r, pr, c, pc)
    return out.reshape(N, Cout, 2 * H, 2 * W)


def reference_forward(x_nchw, w_oihw, bias):
    """Pure-JAX reference: nearest 2x upsample + conv2d (NCHW, OIHW)."""
    x_up = jnp.repeat(jnp.repeat(x_nchw, 2, axis=2), 2, axis=3)
    out = lax.conv_general_dilated(
        x_up, w_oihw, window_strides=(1, 1), padding=((1, 1), (1, 1)),
        dimension_numbers=("NCHW", "OIHW", "NCHW"))
    return out + bias.reshape(1, -1, 1, 1)


if __name__ == "__main__":
    # Small shapes consistent with the module: N=2, ch_in=4, 16x16 spatial.
    N, C, H, W = 2, 4, 16, 16
    key = jax.random.PRNGKey(0)
    kx, kw, kb = jax.random.split(key, 3)
    x = jax.random.normal(kx, (N, C, H, W), dtype=jnp.float32)

    # Deterministic Conv2d(ch_in, ch_in, 3, padding=1) params, PyTorch-style
    # uniform(-1/sqrt(fan_in), 1/sqrt(fan_in)) init with fan_in = C*3*3.
    fan_in = C * 3 * 3
    bound = 1.0 / (fan_in ** 0.5)
    w = jax.random.uniform(kw, (C, C, 3, 3), jnp.float32, -bound, bound)   # OIHW
    b = jax.random.uniform(kb, (C,), jnp.float32, -bound, bound)

    ref = jax.block_until_ready(reference_forward(x, w, b))

    fwd = jax.jit(up_sample_forward, static_argnames=("row_tile", "lane_dense_store"))

    # f32 streaming path, strict reference check (weight fusion hoisted out of jit).
    w_f32, b_row = fuse_upsample_conv_params(w, b, compute_dtype=jnp.float32)
    extra = {}
    try:
        out = jax.block_until_ready(fwd(x, w_f32, b_row))
    except Exception:
        # Compat fallback: disable the lane-dense store factorization.
        extra = {"lane_dense_store": False}
        out = jax.block_until_ready(fwd(x, w_f32, b_row, **extra))
    assert out.shape == (N, C, 2 * H, 2 * W)
    err = float(jnp.max(jnp.abs(out - ref)))
    assert err < 1e-3, f"f32 path max abs error {err}"

    # Default bf16 streaming path (halves input/weight DMA bytes), looser check.
    w_bf16, b_row_bf = fuse_upsample_conv_params(w, b)
    out_bf = jax.block_until_ready(fwd(x, w_bf16, b_row_bf, **extra))
    err_bf = float(jnp.max(jnp.abs(out_bf - ref)))
    assert err_bf < 8e-2, f"bf16 path max abs error {err_bf}"

    # Row-tiled path (TH < H): exercises the halo-window DMA kernel.
    out_t = jax.block_until_ready(fwd(x, w_f32, b_row, row_tile=8, **extra))
    err_t = float(jnp.max(jnp.abs(out_t - ref)))
    assert err_t < 1e-3, f"tiled path max abs error {err_t}"

    print("KERNEL_OK")
</pallas_src>

<mosaic_0001>
module attributes {stable_mosaic.version = 11 : i64} {
  func.func @upsample_conv_kernel(%arg0: i32, %arg1: i32, %arg2: memref<1x18x18x4xf32, #tpu.memory_space<vmem>>, %arg3: memref<9x4x16xf32, #tpu.memory_space<vmem>>, %arg4: memref<1x16xf32, #tpu.memory_space<vmem>>, %arg5: memref<1x1x16x256xf32, #tpu.memory_space<vmem>>) attributes {dimension_semantics = [#tpu.dimension_semantics<parallel>, #tpu.dimension_semantics<parallel>], iteration_bounds = array<i64: 2, 1>, scalar_prefetch = 0 : i64, scratch_operands = 0 : i64, tpu.core_type = #tpu.core_type<tc>, window_params = [{transform_indices = @transform_0, window_bounds = array<i64: 1, 18, 18, 4>}, {pipeline_mode = #tpu.pipeline_mode<synchronous>, transform_indices = @transform_1, window_bounds = array<i64: 9, 4, 16>}, {pipeline_mode = #tpu.pipeline_mode<synchronous>, transform_indices = @transform_2, window_bounds = array<i64: 1, 16>}, {transform_indices = @transform_3, window_bounds = array<i64: 1, 1, 16, 256>}]} {
    %c0 = arith.constant 0 : index
    %c0_0 = arith.constant 0 : index
    %c0_1 = arith.constant 0 : index
    %c0_2 = arith.constant 0 : index
    %0 = vector.load %arg2[%c0, %c0_0, %c0_1, %c0_2] : memref<1x18x18x4xf32, #tpu.memory_space<vmem>>, vector<1x18x18x4xf32>
    %1 = vector.shape_cast %0 : vector<1x18x18x4xf32> to vector<18x18x4xf32>
    %cst = arith.constant 0.000000e+00 : f32
    %2 = vector.broadcast %cst : f32 to vector<256x16xf32>
    %3 = vector.extract_strided_slice %1 {offsets = [0, 0, 0], sizes = [16, 16, 4], strides = [1, 1, 1]} : vector<18x18x4xf32> to vector<16x16x4xf32>
    %4 = vector.shape_cast %3 : vector<16x16x4xf32> to vector<256x4xf32>
    %c0_3 = arith.constant 0 : index
    %c0_4 = arith.constant 0 : index
    %c0_5 = arith.constant 0 : index
    %5 = vector.load %arg3[%c0_3, %c0_4, %c0_5] : memref<9x4x16xf32, #tpu.memory_space<vmem>>, vector<1x4x16xf32>
    %6 = vector.shape_cast %5 : vector<1x4x16xf32> to vector<4x16xf32>
    %cst_6 = arith.constant dense<0.000000e+00> : vector<256x16xf32>
    %7 = tpu.matmul %4, %6, %cst_6 {dimension_numbers = #tpu.dot_dimension_numbers<[1], [0], [0], [1], [0, 0, 1, 1], [], []>} : vector<256x4xf32>, vector<4x16xf32>, vector<256x16xf32> -> vector<256x16xf32>
    %8 = arith.addf %2, %7 : vector<256x16xf32>
    %9 = vector.extract_strided_slice %1 {offsets = [0, 1, 0], sizes = [16, 16, 4], strides = [1, 1, 1]} : vector<18x18x4xf32> to vector<16x16x4xf32>
    %10 = vector.shape_cast %9 : vector<16x16x4xf32> to vector<256x4xf32>
    %c1 = arith.constant 1 : index
    %c0_7 = arith.constant 0 : index
    %c0_8 = arith.constant 0 : index
    %11 = vector.load %arg3[%c1, %c0_7, %c0_8] : memref<9x4x16xf32, #tpu.memory_space<vmem>>, vector<1x4x16xf32>
    %12 = vector.shape_cast %11 : vector<1x4x16xf32> to vector<4x16xf32>
    %cst_9 = arith.constant dense<0.000000e+00> : vector<256x16xf32>
    %13 = tpu.matmul %10, %12, %cst_9 {dimension_numbers = #tpu.dot_dimension_numbers<[1], [0], [0], [1], [0, 0, 1, 1], [], []>} : vector<256x4xf32>, vector<4x16xf32>, vector<256x16xf32> -> vector<256x16xf32>
    %14 = arith.addf %8, %13 : vector<256x16xf32>
    %15 = vector.extract_strided_slice %1 {offsets = [0, 2, 0], sizes = [16, 16, 4], strides = [1, 1, 1]} : vector<18x18x4xf32> to vector<16x16x4xf32>
    %16 = vector.shape_cast %15 : vector<16x16x4xf32> to vector<256x4xf32>
    %c2 = arith.constant 2 : index
    %c0_10 = arith.constant 0 : index
    %c0_11 = arith.constant 0 : index
    %17 = vector.load %arg3[%c2, %c0_10, %c0_11] : memref<9x4x16xf32, #tpu.memory_space<vmem>>, vector<1x4x16xf32>
    %18 = vector.shape_cast %17 : vector<1x4x16xf32> to vector<4x16xf32>
    %cst_12 = arith.constant dense<0.000000e+00> : vector<256x16xf32>
    %19 = tpu.matmul %16, %18, %cst_12 {dimension_numbers = #tpu.dot_dimension_numbers<[1], [0], [0], [1], [0, 0, 1, 1], [], []>} : vector<256x4xf32>, vector<4x16xf32>, vector<256x16xf32> -> vector<256x16xf32>
    %20 = arith.addf %14, %19 : vector<256x16xf32>
    %21 = vector.extract_strided_slice %1 {offsets = [1, 0, 0], sizes = [16, 16, 4], strides = [1, 1, 1]} : vector<18x18x4xf32> to vector<16x16x4xf32>
    %22 = vector.shape_cast %21 : vector<16x16x4xf32> to vector<256x4xf32>
    %c3 = arith.constant 3 : index
    %c0_13 = arith.constant 0 : index
    %c0_14 = arith.constant 0 : index
    %23 = vector.load %arg3[%c3, %c0_13, %c0_14] : memref<9x4x16xf32, #tpu.memory_space<vmem>>, vector<1x4x16xf32>
    %24 = vector.shape_cast %23 : vector<1x4x16xf32> to vector<4x16xf32>
    %cst_15 = arith.constant dense<0.000000e+00> : vector<256x16xf32>
    %25 = tpu.matmul %22, %24, %cst_15 {dimension_numbers = #tpu.dot_dimension_numbers<[1], [0], [0], [1], [0, 0, 1, 1], [], []>} : vector<256x4xf32>, vector<4x16xf32>, vector<256x16xf32> -> vector<256x16xf32>
    %26 = arith.addf %20, %25 : vector<256x16xf32>
    %27 = vector.extract_strided_slice %1 {offsets = [1, 1, 0], sizes = [16, 16, 4], strides = [1, 1, 1]} : vector<18x18x4xf32> to vector<16x16x4xf32>
    %28 = vector.shape_cast %27 : vector<16x16x4xf32> to vector<256x4xf32>
    %c4 = arith.constant 4 : index
    %c0_16 = arith.constant 0 : index
    %c0_17 = arith.constant 0 : index
    %29 = vector.load %arg3[%c4, %c0_16, %c0_17] : memref<9x4x16xf32, #tpu.memory_space<vmem>>, vector<1x4x16xf32>
    %30 = vector.shape_cast %29 : vector<1x4x16xf32> to vector<4x16xf32>
    %cst_18 = arith.constant dense<0.000000e+00> : vector<256x16xf32>
    %31 = tpu.matmul %28, %30, %cst_18 {dimension_numbers = #tpu.dot_dimension_numbers<[1], [0], [0], [1], [0, 0, 1, 1], [], []>} : vector<256x4xf32>, vector<4x16xf32>, vector<256x16xf32> -> vector<256x16xf32>
    %32 = arith.addf %26, %31 : vector<256x16xf32>
    %33 = vector.extract_strided_slice %1 {offsets = [1, 2, 0], sizes = [16, 16, 4], strides = [1, 1, 1]} : vector<18x18x4xf32> to vector<16x16x4xf32>
    %34 = vector.shape_cast %33 : vector<16x16x4xf32> to vector<256x4xf32>
    %c5 = arith.constant 5 : index
    %c0_19 = arith.constant 0 : index
    %c0_20 = arith.constant 0 : index
    %35 = vector.load %arg3[%c5, %c0_19, %c0_20] : memref<9x4x16xf32, #tpu.memory_space<vmem>>, vector<1x4x16xf32>
    %36 = vector.shape_cast %35 : vector<1x4x16xf32> to vector<4x16xf32>
    %cst_21 = arith.constant dense<0.000000e+00> : vector<256x16xf32>
    %37 = tpu.matmul %34, %36, %cst_21 {dimension_numbers = #tpu.dot_dimension_numbers<[1], [0], [0], [1], [0, 0, 1, 1], [], []>} : vector<256x4xf32>, vector<4x16xf32>, vector<256x16xf32> -> vector<256x16xf32>
    %38 = arith.addf %32, %37 : vector<256x16xf32>
    %39 = vector.extract_strided_slice %1 {offsets = [2, 0, 0], sizes = [16, 16, 4], strides = [1, 1, 1]} : vector<18x18x4xf32> to vector<16x16x4xf32>
    %40 = vector.shape_cast %39 : vector<16x16x4xf32> to vector<256x4xf32>
    %c6 = arith.constant 6 : index
    %c0_22 = arith.constant 0 : index
    %c0_23 = arith.constant 0 : index
    %41 = vector.load %arg3[%c6, %c0_22, %c0_23] : memref<9x4x16xf32, #tpu.memory_space<vmem>>, vector<1x4x16xf32>
    %42 = vector.shape_cast %41 : vector<1x4x16xf32> to vector<4x16xf32>
    %cst_24 = arith.constant dense<0.000000e+00> : vector<256x16xf32>
    %43 = tpu.matmul %40, %42, %cst_24 {dimension_numbers = #tpu.dot_dimension_numbers<[1], [0], [0], [1], [0, 0, 1, 1], [], []>} : vector<256x4xf32>, vector<4x16xf32>, vector<256x16xf32> -> vector<256x16xf32>
    %44 = arith.addf %38, %43 : vector<256x16xf32>
    %45 = vector.extract_strided_slice %1 {offsets = [2, 1, 0], sizes = [16, 16, 4], strides = [1, 1, 1]} : vector<18x18x4xf32> to vector<16x16x4xf32>
    %46 = vector.shape_cast %45 : vector<16x16x4xf32> to vector<256x4xf32>
    %c7 = arith.constant 7 : index
    %c0_25 = arith.constant 0 : index
    %c0_26 = arith.constant 0 : index
    %47 = vector.load %arg3[%c7, %c0_25, %c0_26] : memref<9x4x16xf32, #tpu.memory_space<vmem>>, vector<1x4x16xf32>
    %48 = vector.shape_cast %47 : vector<1x4x16xf32> to vector<4x16xf32>
    %cst_27 = arith.constant dense<0.000000e+00> : vector<256x16xf32>
    %49 = tpu.matmul %46, %48, %cst_27 {dimension_numbers = #tpu.dot_dimension_numbers<[1], [0], [0], [1], [0, 0, 1, 1], [], []>} : vector<256x4xf32>, vector<4x16xf32>, vector<256x16xf32> -> vector<256x16xf32>
    %50 = arith.addf %44, %49 : vector<256x16xf32>
    %51 = vector.extract_strided_slice %1 {offsets = [2, 2, 0], sizes = [16, 16, 4], strides = [1, 1, 1]} : vector<18x18x4xf32> to vector<16x16x4xf32>
    %52 = vector.shape_cast %51 : vector<16x16x4xf32> to vector<256x4xf32>
    %c8 = arith.constant 8 : index
    %c0_28 = arith.constant 0 : index
    %c0_29 = arith.constant 0 : index
    %53 = vector.load %arg3[%c8, %c0_28, %c0_29] : memref<9x4x16xf32, #tpu.memory_space<vmem>>, vector<1x4x16xf32>
    %54 = vector.shape_cast %53 : vector<1x4x16xf32> to vector<4x16xf32>
    %cst_30 = arith.constant dense<0.000000e+00> : vector<256x16xf32>
    %55 = tpu.matmul %52, %54, %cst_30 {dimension_numbers = #tpu.dot_dimension_numbers<[1], [0], [0], [1], [0, 0, 1, 1], [], []>} : vector<256x4xf32>, vector<4x16xf32>, vector<256x16xf32> -> vector<256x16xf32>
    %56 = arith.addf %50, %55 : vector<256x16xf32>
    %c0_31 = arith.constant 0 : index
    %c0_32 = arith.constant 0 : index
    %57 = vector.load %arg4[%c0_31, %c0_32] : memref<1x16xf32, #tpu.memory_space<vmem>>, vector<1x16xf32>
    %58 = vector.broadcast %57 : vector<1x16xf32> to vector<256x16xf32>
    %59 = arith.addf %56, %58 : vector<256x16xf32>
    %60 = vector.shape_cast %59 : vector<256x16xf32> to vector<16x256xf32>
    %c0_33 = arith.constant 0 : index
    %c0_34 = arith.constant 0 : index
    %c0_35 = arith.constant 0 : index
    %c0_36 = arith.constant 0 : index
    %61 = vector.load %arg5[%c0_33, %c0_34, %c0_35, %c0_36] : memref<1x1x16x256xf32, #tpu.memory_space<vmem>>, vector<1x1x16x256xf32>
    %62 = vector.shape_cast %61 : vector<1x1x16x256xf32> to vector<16x256xf32>
    %63 = vector.shape_cast %60 : vector<16x256xf32> to vector<1x1x16x256xf32>
    tpu.vector_store %arg5[%c0_33, %c0_34, %c0_35, %c0_36], %63 {strides = array<i32>} : memref<1x1x16x256xf32, #tpu.memory_space<vmem>>, vector<1x1x16x256xf32>,
    return
  }
  func.func @transform_0(%arg0: i32, %arg1: i32) -> (i32, i32, i32, i32) {
    %c0_i32 = arith.constant 0 : i32
    %c0_i32_0 = arith.constant 0 : i32
    %c0_i32_1 = arith.constant 0 : i32
    %c0_i32_2 = arith.constant 0 : i32
    return %arg0, %c0_i32, %c0_i32_0, %c0_i32_1 : i32, i32, i32, i32
  }
  func.func @transform_1(%arg0: i32, %arg1: i32) -> (i32, i32, i32) {
    %c0_i32 = arith.constant 0 : i32
    %c0_i32_0 = arith.constant 0 : i32
    %c0_i32_1 = arith.constant 0 : i32
    %c0_i32_2 = arith.constant 0 : i32
    return %c0_i32, %c0_i32_0, %c0_i32_1 : i32, i32, i32
  }
  func.func @transform_2(%arg0: i32, %arg1: i32) -> (i32, i32) {
    %c0_i32 = arith.constant 0 : i32
    %c0_i32_0 = arith.constant 0 : i32
    %c0_i32_1 = arith.constant 0 : i32
    return %c0_i32, %c0_i32_0 : i32, i32
  }
  func.func @transform_3(%arg0: i32, %arg1: i32) -> (i32, i32, i32, i32) {
    %c0_i32 = arith.constant 0 : i32
    %c0_i32_0 = arith.constant 0 : i32
    %c0_i32_1 = arith.constant 0 : i32
    return %arg0, %arg1, %c0_i32, %c0_i32_0 : i32, i32, i32, i32
  }
}

module attributes {stable_mosaic.version = 11 : i64} {
  func.func @upsample_conv_kernel(%arg0: i32, %arg1: i32, %arg2: memref<1x18x18x4xf32, #tpu.memory_space<vmem>>, %arg3: memref<9x4x16xf32, #tpu.memory_space<vmem>>, %arg4: memref<1x16xf32, #tpu.memory_space<vmem>>, %arg5: memref<1x1x256x16xf32, #tpu.memory_space<vmem>>) attributes {dimension_semantics = [#tpu.dimension_semantics<parallel>, #tpu.dimension_semantics<parallel>], iteration_bounds = array<i64: 2, 1>, scalar_prefetch = 0 : i64, scratch_operands = 0 : i64, tpu.core_type = #tpu.core_type<tc>, window_params = [{transform_indices = @transform_0, window_bounds = array<i64: 1, 18, 18, 4>}, {pipeline_mode = #tpu.pipeline_mode<synchronous>, transform_indices = @transform_1, window_bounds = array<i64: 9, 4, 16>}, {pipeline_mode = #tpu.pipeline_mode<synchronous>, transform_indices = @transform_2, window_bounds = array<i64: 1, 16>}, {transform_indices = @transform_3, window_bounds = array<i64: 1, 1, 256, 16>}]} {
    %c0 = arith.constant 0 : index
    %c0_0 = arith.constant 0 : index
    %c0_1 = arith.constant 0 : index
    %c0_2 = arith.constant 0 : index
    %0 = vector.load %arg2[%c0, %c0_0, %c0_1, %c0_2] : memref<1x18x18x4xf32, #tpu.memory_space<vmem>>, vector<1x18x18x4xf32>
    %1 = vector.shape_cast %0 : vector<1x18x18x4xf32> to vector<18x18x4xf32>
    %cst = arith.constant 0.000000e+00 : f32
    %2 = vector.broadcast %cst : f32 to vector<256x16xf32>
    %3 = vector.extract_strided_slice %1 {offsets = [0, 0, 0], sizes = [16, 16, 4], strides = [1, 1, 1]} : vector<18x18x4xf32> to vector<16x16x4xf32>
    %4 = vector.shape_cast %3 : vector<16x16x4xf32> to vector<256x4xf32>
    %c0_3 = arith.constant 0 : index
    %c0_4 = arith.constant 0 : index
    %c0_5 = arith.constant 0 : index
    %5 = vector.load %arg3[%c0_3, %c0_4, %c0_5] : memref<9x4x16xf32, #tpu.memory_space<vmem>>, vector<1x4x16xf32>
    %6 = vector.shape_cast %5 : vector<1x4x16xf32> to vector<4x16xf32>
    %cst_6 = arith.constant dense<0.000000e+00> : vector<256x16xf32>
    %7 = tpu.matmul %4, %6, %cst_6 {dimension_numbers = #tpu.dot_dimension_numbers<[1], [0], [0], [1], [0, 0, 1, 1], [], []>} : vector<256x4xf32>, vector<4x16xf32>, vector<256x16xf32> -> vector<256x16xf32>
    %8 = arith.addf %2, %7 : vector<256x16xf32>
    %9 = vector.extract_strided_slice %1 {offsets = [0, 1, 0], sizes = [16, 16, 4], strides = [1, 1, 1]} : vector<18x18x4xf32> to vector<16x16x4xf32>
    %10 = vector.shape_cast %9 : vector<16x16x4xf32> to vector<256x4xf32>
    %c1 = arith.constant 1 : index
    %c0_7 = arith.constant 0 : index
    %c0_8 = arith.constant 0 : index
    %11 = vector.load %arg3[%c1, %c0_7, %c0_8] : memref<9x4x16xf32, #tpu.memory_space<vmem>>, vector<1x4x16xf32>
    %12 = vector.shape_cast %11 : vector<1x4x16xf32> to vector<4x16xf32>
    %cst_9 = arith.constant dense<0.000000e+00> : vector<256x16xf32>
    %13 = tpu.matmul %10, %12, %cst_9 {dimension_numbers = #tpu.dot_dimension_numbers<[1], [0], [0], [1], [0, 0, 1, 1], [], []>} : vector<256x4xf32>, vector<4x16xf32>, vector<256x16xf32> -> vector<256x16xf32>
    %14 = arith.addf %8, %13 : vector<256x16xf32>
    %15 = vector.extract_strided_slice %1 {offsets = [0, 2, 0], sizes = [16, 16, 4], strides = [1, 1, 1]} : vector<18x18x4xf32> to vector<16x16x4xf32>
    %16 = vector.shape_cast %15 : vector<16x16x4xf32> to vector<256x4xf32>
    %c2 = arith.constant 2 : index
    %c0_10 = arith.constant 0 : index
    %c0_11 = arith.constant 0 : index
    %17 = vector.load %arg3[%c2, %c0_10, %c0_11] : memref<9x4x16xf32, #tpu.memory_space<vmem>>, vector<1x4x16xf32>
    %18 = vector.shape_cast %17 : vector<1x4x16xf32> to vector<4x16xf32>
    %cst_12 = arith.constant dense<0.000000e+00> : vector<256x16xf32>
    %19 = tpu.matmul %16, %18, %cst_12 {dimension_numbers = #tpu.dot_dimension_numbers<[1], [0], [0], [1], [0, 0, 1, 1], [], []>} : vector<256x4xf32>, vector<4x16xf32>, vector<256x16xf32> -> vector<256x16xf32>
    %20 = arith.addf %14, %19 : vector<256x16xf32>
    %21 = vector.extract_strided_slice %1 {offsets = [1, 0, 0], sizes = [16, 16, 4], strides = [1, 1, 1]} : vector<18x18x4xf32> to vector<16x16x4xf32>
    %22 = vector.shape_cast %21 : vector<16x16x4xf32> to vector<256x4xf32>
    %c3 = arith.constant 3 : index
    %c0_13 = arith.constant 0 : index
    %c0_14 = arith.constant 0 : index
    %23 = vector.load %arg3[%c3, %c0_13, %c0_14] : memref<9x4x16xf32, #tpu.memory_space<vmem>>, vector<1x4x16xf32>
    %24 = vector.shape_cast %23 : vector<1x4x16xf32> to vector<4x16xf32>
    %cst_15 = arith.constant dense<0.000000e+00> : vector<256x16xf32>
    %25 = tpu.matmul %22, %24, %cst_15 {dimension_numbers = #tpu.dot_dimension_numbers<[1], [0], [0], [1], [0, 0, 1, 1], [], []>} : vector<256x4xf32>, vector<4x16xf32>, vector<256x16xf32> -> vector<256x16xf32>
    %26 = arith.addf %20, %25 : vector<256x16xf32>
    %27 = vector.extract_strided_slice %1 {offsets = [1, 1, 0], sizes = [16, 16, 4], strides = [1, 1, 1]} : vector<18x18x4xf32> to vector<16x16x4xf32>
    %28 = vector.shape_cast %27 : vector<16x16x4xf32> to vector<256x4xf32>
    %c4 = arith.constant 4 : index
    %c0_16 = arith.constant 0 : index
    %c0_17 = arith.constant 0 : index
    %29 = vector.load %arg3[%c4, %c0_16, %c0_17] : memref<9x4x16xf32, #tpu.memory_space<vmem>>, vector<1x4x16xf32>
    %30 = vector.shape_cast %29 : vector<1x4x16xf32> to vector<4x16xf32>
    %cst_18 = arith.constant dense<0.000000e+00> : vector<256x16xf32>
    %31 = tpu.matmul %28, %30, %cst_18 {dimension_numbers = #tpu.dot_dimension_numbers<[1], [0], [0], [1], [0, 0, 1, 1], [], []>} : vector<256x4xf32>, vector<4x16xf32>, vector<256x16xf32> -> vector<256x16xf32>
    %32 = arith.addf %26, %31 : vector<256x16xf32>
    %33 = vector.extract_strided_slice %1 {offsets = [1, 2, 0], sizes = [16, 16, 4], strides = [1, 1, 1]} : vector<18x18x4xf32> to vector<16x16x4xf32>
    %34 = vector.shape_cast %33 : vector<16x16x4xf32> to vector<256x4xf32>
    %c5 = arith.constant 5 : index
    %c0_19 = arith.constant 0 : index
    %c0_20 = arith.constant 0 : index
    %35 = vector.load %arg3[%c5, %c0_19, %c0_20] : memref<9x4x16xf32, #tpu.memory_space<vmem>>, vector<1x4x16xf32>
    %36 = vector.shape_cast %35 : vector<1x4x16xf32> to vector<4x16xf32>
    %cst_21 = arith.constant dense<0.000000e+00> : vector<256x16xf32>
    %37 = tpu.matmul %34, %36, %cst_21 {dimension_numbers = #tpu.dot_dimension_numbers<[1], [0], [0], [1], [0, 0, 1, 1], [], []>} : vector<256x4xf32>, vector<4x16xf32>, vector<256x16xf32> -> vector<256x16xf32>
    %38 = arith.addf %32, %37 : vector<256x16xf32>
    %39 = vector.extract_strided_slice %1 {offsets = [2, 0, 0], sizes = [16, 16, 4], strides = [1, 1, 1]} : vector<18x18x4xf32> to vector<16x16x4xf32>
    %40 = vector.shape_cast %39 : vector<16x16x4xf32> to vector<256x4xf32>
    %c6 = arith.constant 6 : index
    %c0_22 = arith.constant 0 : index
    %c0_23 = arith.constant 0 : index
    %41 = vector.load %arg3[%c6, %c0_22, %c0_23] : memref<9x4x16xf32, #tpu.memory_space<vmem>>, vector<1x4x16xf32>
    %42 = vector.shape_cast %41 : vector<1x4x16xf32> to vector<4x16xf32>
    %cst_24 = arith.constant dense<0.000000e+00> : vector<256x16xf32>
    %43 = tpu.matmul %40, %42, %cst_24 {dimension_numbers = #tpu.dot_dimension_numbers<[1], [0], [0], [1], [0, 0, 1, 1], [], []>} : vector<256x4xf32>, vector<4x16xf32>, vector<256x16xf32> -> vector<256x16xf32>
    %44 = arith.addf %38, %43 : vector<256x16xf32>
    %45 = vector.extract_strided_slice %1 {offsets = [2, 1, 0], sizes = [16, 16, 4], strides = [1, 1, 1]} : vector<18x18x4xf32> to vector<16x16x4xf32>
    %46 = vector.shape_cast %45 : vector<16x16x4xf32> to vector<256x4xf32>
    %c7 = arith.constant 7 : index
    %c0_25 = arith.constant 0 : index
    %c0_26 = arith.constant 0 : index
    %47 = vector.load %arg3[%c7, %c0_25, %c0_26] : memref<9x4x16xf32, #tpu.memory_space<vmem>>, vector<1x4x16xf32>
    %48 = vector.shape_cast %47 : vector<1x4x16xf32> to vector<4x16xf32>
    %cst_27 = arith.constant dense<0.000000e+00> : vector<256x16xf32>
    %49 = tpu.matmul %46, %48, %cst_27 {dimension_numbers = #tpu.dot_dimension_numbers<[1], [0], [0], [1], [0, 0, 1, 1], [], []>} : vector<256x4xf32>, vector<4x16xf32>, vector<256x16xf32> -> vector<256x16xf32>
    %50 = arith.addf %44, %49 : vector<256x16xf32>
    %51 = vector.extract_strided_slice %1 {offsets = [2, 2, 0], sizes = [16, 16, 4], strides = [1, 1, 1]} : vector<18x18x4xf32> to vector<16x16x4xf32>
    %52 = vector.shape_cast %51 : vector<16x16x4xf32> to vector<256x4xf32>
    %c8 = arith.constant 8 : index
    %c0_28 = arith.constant 0 : index
    %c0_29 = arith.constant 0 : index
    %53 = vector.load %arg3[%c8, %c0_28, %c0_29] : memref<9x4x16xf32, #tpu.memory_space<vmem>>, vector<1x4x16xf32>
    %54 = vector.shape_cast %53 : vector<1x4x16xf32> to vector<4x16xf32>
    %cst_30 = arith.constant dense<0.000000e+00> : vector<256x16xf32>
    %55 = tpu.matmul %52, %54, %cst_30 {dimension_numbers = #tpu.dot_dimension_numbers<[1], [0], [0], [1], [0, 0, 1, 1], [], []>} : vector<256x4xf32>, vector<4x16xf32>, vector<256x16xf32> -> vector<256x16xf32>
    %56 = arith.addf %50, %55 : vector<256x16xf32>
    %c0_31 = arith.constant 0 : index
    %c0_32 = arith.constant 0 : index
    %57 = vector.load %arg4[%c0_31, %c0_32] : memref<1x16xf32, #tpu.memory_space<vmem>>, vector<1x16xf32>
    %58 = vector.broadcast %57 : vector<1x16xf32> to vector<256x16xf32>
    %59 = arith.addf %56, %58 : vector<256x16xf32>
    %c0_33 = arith.constant 0 : index
    %c0_34 = arith.constant 0 : index
    %c0_35 = arith.constant 0 : index
    %c0_36 = arith.constant 0 : index
    %60 = vector.load %arg5[%c0_33, %c0_34, %c0_35, %c0_36] : memref<1x1x256x16xf32, #tpu.memory_space<vmem>>, vector<1x1x256x16xf32>
    %61 = vector.shape_cast %60 : vector<1x1x256x16xf32> to vector<256x16xf32>
    %62 = vector.shape_cast %59 : vector<256x16xf32> to vector<1x1x256x16xf32>
    tpu.vector_store %arg5[%c0_33, %c0_34, %c0_35, %c0_36], %62 {strides = array<i32>} : memref<1x1x256x16xf32, #tpu.memory_space<vmem>>, vector<1x1x256x16xf32>,
    return
  }
  func.func @transform_0(%arg0: i32, %arg1: i32) -> (i32, i32, i32, i32) {
    %c0_i32 = arith.constant 0 : i32
    %c0_i32_0 = arith.constant 0 : i32
    %c0_i32_1 = arith.constant 0 : i32
    %c0_i32_2 = arith.constant 0 : i32
    return %arg0, %c0_i32, %c0_i32_0, %c0_i32_1 : i32, i32, i32, i32
  }
  func.func @transform_1(%arg0: i32, %arg1: i32) -> (i32, i32, i32) {
    %c0_i32 = arith.constant 0 : i32
    %c0_i32_0 = arith.constant 0 : i32
    %c0_i32_1 = arith.constant 0 : i32
    %c0_i32_2 = arith.constant 0 : i32
    return %c0_i32, %c0_i32_0, %c0_i32_1 : i32, i32, i32
  }
  func.func @transform_2(%arg0: i32, %arg1: i32) -> (i32, i32) {
    %c0_i32 = arith.constant 0 : i32
    %c0_i32_0 = arith.constant 0 : i32
    %c0_i32_1 = arith.constant 0 : i32
    return %c0_i32, %c0_i32_0 : i32, i32
  }
  func.func @transform_3(%arg0: i32, %arg1: i32) -> (i32, i32, i32, i32) {
    %c0_i32 = arith.constant 0 : i32
    %c0_i32_0 = arith.constant 0 : i32
    %c0_i32_1 = arith.constant 0 : i32
    return %arg0, %arg1, %c0_i32, %c0_i32_0 : i32, i32, i32, i32
  }
}

</mosaic_0001>

<bundles_post_ra>
// kernel: up_sample_forward.1
= control target key start
LH: loop header
LB: loop body
LE: loop exit
PB: predicated region body
PF: predicated region fallthrough
CT: control target
= control target key end

     0   :  { %s4540_s12 = smov 0   ;;  %s4542_s13 = smov 0   ;;  %s5788_s0 = inlined_call_operand.vmem [shape: f32[2,18,18,4], index: 0, kind: input, shape index: {}]   ;;  %s5789_s1 = inlined_call_operand.vmem [shape: f32[9,4,16], index: 1, kind: input, shape index: {}]   ;;  %s5790_s2 = inlined_call_operand.vmem [shape: f32[1,16], index: 2, kind: input, shape index: {}]   ;;  %s5791_s3 = inlined_call_operand.vmem [shape: f32[2,1,256,16], index: 3, kind: output, shape index: {}]  }
   0x1   :  { %s4544_s14 = smov 0  }
   0x2 LB: > { %s25_s15 = sadd.s32 1, %s4514_s13  ;;  %p3153_p0 = scmp.ge.s32.totalorder %s4518_s14, 1  ;;  %s4518_s14 = sphi %s4544_s14, %s13_s14   ;;  %s4514_s13 = sphi %s4542_s13, %s5967_s13   ;;  %s4510_s12 = sphi %s4540_s12, %s5966_s12  }
   0x3   : > { %p27_p1 = scmp.ge.s32.totalorder %s25_s15, 2  ;;  %p151_p2 = scmp.lt.s32.totalorder %s4518_s14, 3 }
   0x5   : > { %s5969_s15 = smov (%p27_p1, %s25_s15), 0  ;;  %p152_p3 = pnand %p3153_p0, %p151_p2 }
   0x7   : > { %155 = sbr.rel (%p152_p3) target bundleno = 528 (0x210), region = 32 }
   0xe   : > { %v3157_v0 = vld [vmem:[%s5789_s1 + $0x4] sm:$0xf]  ;;  %vm444_vm0 = vcmask 1043456   ;;  %v4564_v1 = vld [vmem:[%s5789_s1 + $0x10] sm:$0xf]  ;;  %p179_p4 = scmp.lt.s32.totalorder %s4510_s12, 1 }
   0xf   : > { %3763 = vmatprep.subr.msk.mxu1 %vm444_vm0, %v3157_v0  ;;  %3963 = vmatprep.subr.msk.mxu0 %vm444_vm0, %v4564_v1  ;;  %v247_v2 = vld [vmem:[%s5789_s1] sm:$0xf]  ;;  %v3326_v3 = vld [vmem:[%s5789_s1 + $0x14] sm:$0xf]  ;;  %vm296_vm1 = vcmask 1046528   ;;  %vm379_vm2 = vcmask 31744  }
  0x10   : > { %3764 = vmatpush3.msk.msra.mxu1 %vm444_vm0, %v3157_v0  ;;  %3964 = vmatpush3.msk.msra.mxu0 %vm444_vm0, %v4564_v1  ;;  %s5971_s12 = smov (!%p179_p4, %s4510_s12), 1  ;;  %v4651_v33 = vld [vmem:[%s5789_s1 + $0x18] sm:$0xf]  ;;  %v4661_v35 = vld [vmem:[%s5789_s1 + $0x8] sm:$0xf]  ;;  %vm965_vm3 = vcmask 1045504  }
  0x11   : > { %3813 = vmatprep.subr.msk.mxu1 %vm444_vm0, %v247_v2  ;;  %4013 = vmatprep.subr.msk.mxu0 %vm444_vm0, %v3326_v3  ;;  %s4471_s24 = smul.u32 432, %s5971_s12  ;;  %s3465_s11 = sshll.u32 %s5971_s12, 8  ;;  %vm3033_vm4 = vcmask 130048  }
  0x12   : > { %s5680_s20 = scalar_lea.vmem %s5791_s3, %s3465_s11 }
  0x13   : > { %s4586_s27 = scalar_lea.vmem %s5788_s0, %s4471_s24 }
  0x14   : > { %v4589_v4 = vld [vmem:[%s4586_s27] sm:$0xff]  ;;  %v4592_v5 = vld [vmem:[%s4586_s27 + $0x8] sm:$0xff]  ;;  %v4595_v6 = vld [vmem:[%s4586_s27 + $0x18] sm:$0xff] }
  0x15   : > { %5865 = vst [vmem:[#allocation2_spill] sm:$0xff] %v4595_v6  ;;  %v297_v7 = vrot.slane %v4589_v4, 1  ;;  %v298_v8 = vrot.slane %v4592_v5, 1  ;;  %v4600_v9 = vld [vmem:[%s4586_s27 + $0x20] sm:$0xff]  ;;  %v302_v10 = vrot.slane %v4595_v6, 1  ;;  %v4612_v15 = vld [vmem:[%s4586_s27 + $0x30] sm:$0xff] }
  0x16   : > { %5866 = vst [vmem:[#allocation3_spill] sm:$0xff] %v4600_v9  ;;  %v4604_v11 = vld [vmem:[%s4586_s27 + $0x10] sm:$0x3]  ;;  %v303_v12 = vrot.slane %v4600_v9, 1  ;;  %v4609_v14 = vld [vmem:[%s4586_s27 + $0x28] sm:$0x3] }
  0x17   : > { %v300_v13 = vrot.slane %v4604_v11, 1  ;;  %v299_v16 = vsel %vm296_vm1, %v297_v7, %v298_v8  ;;  %v305_v17 = vrot.slane %v4609_v14, 1  ;;  %v4617_v18 = vld [vmem:[%s4586_s27 + $0x38] sm:$0xff]  ;;  %v307_v19 = vrot.slane %v4612_v15, 1  ;;  %v4621_v20 = vld [vmem:[%s4586_s27 + $0x40] sm:$0x3] }
  0x18   : > { %3765 = vmatprep.mubr.msk.f32.mxu1 %vm379_vm2, %v299_v16  ;;  %v304_v21 = vsel %vm296_vm1, %v302_v10, %v303_v12  ;;  %v308_v23 = vrot.slane %v4617_v18, 1  ;;  %v310_v24 = vrot.slane %v4621_v20, 1  ;;  %v4629_v25 = vld [vmem:[%s4586_s27 + $0x48] sm:$0xff]  ;;  %v4632_v26 = vld [vmem:[%s4586_s27 + $0x50] sm:$0xff]  ;;  %v4635_v27 = vld [vmem:[%s4586_s27 + $0x58] sm:$0x3] }
  0x19   : > { %v301_v22 = vsel %vm296_vm1, %v298_v8, %v300_v13  ;;  %3965 = vmatprep.mubr.msk.f32.mxu0 %vm379_vm2, %v304_v21  ;;  %v306_v28 = vsel %vm296_vm1, %v303_v12, %v305_v17  ;;  %v312_v29 = vrot.slane %v4629_v25, 1  ;;  %v313_v30 = vrot.slane %v4632_v26, 1  ;;  %v4643_v31 = vld [vmem:[%s4586_s27 + $0x60] sm:$0xff]  ;;  %v4646_v32 = vld [vmem:[%s4586_s27 + $0x68] sm:$0xff]  ;;  %v4677_v41 = vld [vmem:[%s4586_s27 + $0x70] sm:$0x3] }
  0x1a   : > { %3766 = vmatmul.mubr.msk.f32.vlgmr.msra.gmra.mrb[0].mxu1 %vm379_vm2, %v301_v22  ;;  %3966 = vmatmul.mubr.msk.f32.vlgmr.msra.gmra.mrb[0].mxu0 %vm379_vm2, %v306_v28  ;;  %v4656_v34 = vsel %vm296_vm1, %v307_v19, %v308_v23  ;;  %v4666_v36 = vsel %vm296_vm1, %v308_v23, %v310_v24  ;;  %v315_v37 = vrot.slane %v4635_v27, 1  ;;  %v317_v39 = vrot.slane %v4643_v31, 1  ;;  %v4683_v42 = vld [vmem:[%s4586_s27 + $0x78] sm:$0xff]  ;;  %v4686_v43 = vld [vmem:[%s4586_s27 + $0x80] sm:$0xff]  ;;  %v4706_v49 = vld [vmem:[%s4586_s27 + $0x88] sm:$0x3] }
  0x1b   : > { %3814 = vmatpush3.msk.msra.mxu1 %vm444_vm0, %v247_v2  ;;  %5867 = vst [vmem:[#allocation4_spill] sm:$0xff] %v4656_v34  ;;  %4014 = vmatpush3.msk.msra.mxu0 %vm444_vm0, %v3326_v3  ;;  %5868 = vst [vmem:[#allocation5_spill] sm:$0xff] %v4666_v36  ;;  %v4672_v38 = vsel %vm296_vm1, %v312_v29, %v313_v30  ;;  %v318_v40 = vrot.slane %v4646_v32, 1  ;;  %v320_v45 = vrot.slane %v4677_v41, 1  ;;  %v322_v47 = vrot.slane %v4683_v42, 1  ;;  %v4711_v50 = vld [vmem:[%s4586_s27 + $0x90] sm:$0xff] }
  0x1c   : > { %3768 = vmatprep.mubr.msk.f32.mxu1 %vm379_vm2, %v304_v21  ;;  %3968 = vmatprep.mubr.msk.f32.mxu0 %vm379_vm2, %v4656_v34  ;;  %5869 = vst [vmem:[#allocation6_spill] sm:$0xff] %v4672_v38  ;;  %v4697_v44 = vsel %vm296_vm1, %v313_v30, %v315_v37  ;;  %v323_v48 = vrot.slane %v4686_v43, 1  ;;  %v4714_v51 = vld [vmem:[%s4586_s27 + $0x98] sm:$0xff]  ;;  %v325_v53 = vrot.slane %v4706_v49, 1  ;;  %v327_v55 = vrot.slane %v4711_v50, 1  ;;  %v4737_v58 = vld [vmem:[%s4586_s27 + $0xa8] sm:$0xff] }
  0x1d   : > { %4063 = vmatprep.subr.msk.mxu0 %vm444_vm0, %v4651_v33  ;;  %3863 = vmatprep.subr.msk.mxu1 %vm444_vm0, %v4661_v35  ;;  %5870 = vst [vmem:[#allocation7_spill] sm:$0xff] %v4697_v44  ;;  %v4701_v46 = vsel %vm296_vm1, %v317_v39, %v318_v40  ;;  %v4723_v52 = vsel %vm296_vm1, %v318_v40, %v320_v45  ;;  %v328_v56 = vrot.slane %v4714_v51, 1  ;;  %v4732_v57 = vld [vmem:[%s4586_s27 + $0xa0] sm:$0x3]  ;;  %v4740_v59 = vld [vmem:[%s4586_s27 + $0xb0] sm:$0xff]  ;;  %v332_v63 = vrot.slane %v4737_v58, 1 }
  0x1e   : > { %3769 = vmatmul.mubr.msk.f32.gmra.mrb[2].mxu1 %vm379_vm2, %v306_v28  ;;  %3969 = vmatmul.mubr.msk.f32.gmra.mrb[2].mxu0 %vm379_vm2, %v4666_v36  ;;  %5871 = vst [vmem:[#allocation8_spill] sm:$0xff] %v4701_v46  ;;  %5872 = vst [vmem:[#allocation9_spill] sm:$0xff] %v4723_v52  ;;  %v4727_v54 = vsel %vm296_vm1, %v322_v47, %v323_v48  ;;  %v4749_v60 = vsel %vm296_vm1, %v323_v48, %v325_v53  ;;  %v330_v61 = vrot.slane %v4732_v57, 1  ;;  %v4758_v2 = vld [vmem:[%s4586_s27 + $0xb8] sm:$0x3]  ;;  %v4763_v3 = vld [vmem:[%s4586_s27 + $0xc0] sm:$0xff] }
  0x1f   : > { %3771 = vmatprep.mubr.msk.f32.mxu1 %vm379_vm2, %v4656_v34  ;;  %3971 = vmatprep.mubr.msk.f32.mxu0 %vm379_vm2, %v4672_v38  ;;  %5873 = vst [vmem:[#allocation10_spill] sm:$0xff] %v4727_v54  ;;  %5874 = vst [vmem:[#allocation11_spill] sm:$0xff] %v4749_v60  ;;  %v4753_v62 = vsel %vm296_vm1, %v327_v55, %v328_v56  ;;  %v333_v0 = vrot.slane %v4740_v59, 1  ;;  %v4766_v7 = vld [vmem:[%s4586_s27 + $0xc8] sm:$0xff]  ;;  %v335_v10 = vrot.slane %v4758_v2, 1  ;;  %v337_v13 = vrot.slane %v4763_v3, 1 }
  0x20   : > { %5875 = vst [vmem:[#allocation12_spill] sm:$0xff] %v4753_v62  ;;  %v4775_v8 = vsel %vm296_vm1, %v328_v56, %v330_v61  ;;  %v338_v16 = vrot.slane %v4766_v7, 1  ;;  %v4784_v17 = vld [vmem:[%s4586_s27 + $0xd0] sm:$0x3]  ;;  %v971_v23 = vrot.slane %v4595_v6, 2  ;;  %v972_v24 = vrot.slane %v4600_v9, 2 }
  0x21   : > { %5876 = vst [vmem:[#allocation13_spill] sm:$0xff] %v4775_v8  ;;  %v4779_v12 = vsel %vm296_vm1, %v332_v63, %v333_v0  ;;  %v4795_v19 = vsel %vm296_vm1, %v333_v0, %v335_v10  ;;  %v340_v21 = vrot.slane %v4784_v17, 1  ;;  %v4804_v28 = vld [vmem:[%s4586_s27 + $0xd8] sm:$0xff]  ;;  %v4807_v29 = vld [vmem:[%s4586_s27 + $0xe0] sm:$0xff]  ;;  %v974_v30 = vrot.slane %v4609_v14, 2  ;;  %v4832_v53 = vld [vmem:[%s4586_s27 + $0xf0] sm:$0xff] }
  0x22   : > { %3772 = vmatmul.mubr.msk.f32.gmra.mrb[4].mxu1 %vm379_vm2, %v4666_v36  ;;  %3972 = vmatmul.mubr.msk.f32.gmra.mrb[4].mxu0 %vm379_vm2, %v4697_v44  ;;  %5877 = vst [vmem:[#allocation14_spill] sm:$0xff] %v4779_v12  ;;  %5878 = vst [vmem:[#allocation15_spill] sm:$0xff] %v4795_v19  ;;  %v4799_v22 = vsel %vm296_vm1, %v337_v13, %v338_v16  ;;  %v342_v39 = vrot.slane %v4804_v28, 1  ;;  %v343_v40 = vrot.slane %v4807_v29, 1  ;;  %v4824_v45 = vld [vmem:[%s4586_s27 + $0xe8] sm:$0x3] }
  0x23   : > { %3774 = vmatprep.mubr.msk.f32.mxu1 %vm379_vm2, %v4672_v38  ;;  %3974 = vmatprep.mubr.msk.f32.mxu0 %vm379_vm2, %v4701_v46  ;;  %5879 = vst [vmem:[#allocation16_spill] sm:$0xff] %v4799_v22  ;;  %v4819_v37 = vsel %vm296_vm1, %v338_v16, %v340_v21  ;;  %v4827_v47 = vsel %vm965_vm3, %v971_v23, %v972_v24  ;;  %v976_v48 = vrot.slane %v4612_v15, 2  ;;  %v977_v14 = vrot.slane %v4617_v18, 2  ;;  %v4835_v55 = vld [vmem:[%s4586_s27 + $0xf8] sm:$0xff]  ;;  %v4856_v16 = vld [vmem:[%s4586_s27 + $0x100] sm:$0x3] }
  0x24   : > { %5880 = vst [vmem:[#allocation17_spill] sm:$0xff] %v4819_v37  ;;  %v345_v56 = vrot.slane %v4824_v45, 1  ;;  %v979_v61 = vrot.slane %v4621_v20, 2  ;;  %v4848_v63 = vsel %vm965_vm3, %v972_v24, %v974_v30  ;;  %v4851_v0 = vsel %vm296_vm1, %v342_v39, %v343_v40  ;;  %v4867_v24 = vld [vmem:[%s4586_s27 + $0x110] sm:$0xff]  ;;  %v4874_v30 = vld [vmem:[%s5789_s1 + $0x1c] sm:$0xf] }
  0x25   : > { %5881 = vst [vmem:[#allocation18_spill] sm:$0xff] %v4851_v0  ;;  %v347_v10 = vrot.slane %v4832_v53, 1  ;;  %v348_v13 = vrot.slane %v4835_v55, 1  ;;  %v4859_v21 = vsel %vm965_vm3, %v976_v48, %v977_v14  ;;  %v981_v20 = vrot.slane %v4629_v25, 2  ;;  %v4970_v36 = vld [vmem:[%s4586_s27 + $0x148] sm:$0x3] }
  0x26   : > { %3775 = vmatmul.mubr.msk.f32.gmra.mrb[6].mxu1 %vm379_vm2, %v4697_v44  ;;  %3975 = vmatmul.mubr.msk.f32.gmra.mrb[6].mxu0 %vm379_vm2, %v4723_v52  ;;  %v982_v23 = vrot.slane %v4632_v26, 2  ;;  %v4881_v39 = vsel %vm296_vm1, %v343_v40, %v345_v56  ;;  %v4884_v48 = vsel %vm965_vm3, %v977_v14, %v979_v61  ;;  %v353_v40 = vrot.slane %v4867_v24, 1  ;;  %v4898_v56 = vld [vmem:[%s4586_s27 + $0x118] sm:$0x3] }
  0x27   : > { %3777 = vmatprep.mubr.msk.f32.mxu1 %vm379_vm2, %v4701_v46  ;;  %3977 = vmatprep.mubr.msk.f32.mxu0 %vm379_vm2, %v4727_v54  ;;  %5882 = vst [vmem:[#allocation19_spill] sm:$0xff] %v4881_v39  ;;  %5883 = vst [vmem:[#allocation20_spill] sm:$0xff] %v4884_v48  ;;  %v986_v61 = vrot.slane %v4643_v31, 2  ;;  %v4943_v46 = vld [vmem:[%s4586_s27 + $0x138] sm:$0xff]  ;;  %v994_v44 = vrot.slane %v4706_v49, 2  ;;  %v999_v34 = vrot.slane %v4732_v57, 2 }
  0x28   : > { %v4901_v14 = vsel %vm965_vm3, %v981_v20, %v982_v23  ;;  %v355_v20 = vrot.slane %v4898_v56, 1  ;;  %v362_v38 = vrot.slane %v4943_v46, 1  ;;  %v1001_v57 = vrot.slane %v4737_v58, 2 }
  0x29   : > { %5885 = vst [vmem:[#allocation22_spill] sm:$0xff] %v4901_v14 }
  0x2a   : > { %3778 = vmatmul.mubr.msk.f32.gmra.mrb[8].mxu1 %vm379_vm2, %v4723_v52  ;;  %3978 = vmatmul.mubr.msk.f32.gmra.mrb[8].mxu0 %vm379_vm2, %v4749_v60  ;;  %v4935_v52 = vld [vmem:[%s4586_s27 + $0x130] sm:$0x3] }
  0x2b   : > { %3780 = vmatprep.mubr.msk.f32.mxu1 %vm379_vm2, %v4727_v54  ;;  %3980 = vmatprep.mubr.msk.f32.mxu0 %vm379_vm2, %v4753_v62 }
  0x2e   : > { %3781 = vmatmul.mubr.msk.f32.gmra.mrb[10].mxu1 %vm379_vm2, %v4749_v60  ;;  %3981 = vmatmul.mubr.msk.f32.gmra.mrb[10].mxu0 %vm379_vm2, %v4775_v8 }
  0x2f   : > { %3783 = vmatprep.mubr.msk.f32.mxu1 %vm379_vm2, %v4753_v62  ;;  %3983 = vmatprep.mubr.msk.f32.mxu0 %vm379_vm2, %v4779_v12  ;;  %v989_v62 = vrot.slane %v4677_v41, 2  ;;  %v991_v41 = vrot.slane %v4683_v42, 2 }
  0x32   : > { %3784 = vmatmul.mubr.msk.f32.gmra.mrb[12].mxu1 %vm379_vm2, %v4775_v8  ;;  %3984 = vmatmul.mubr.msk.f32.gmra.mrb[12].mxu0 %vm379_vm2, %v4795_v19  ;;  %v4906_v8 = vld [vmem:[%s4586_s27 + $0x120] sm:$0xff] }
  0x33   : > { %3786 = vmatprep.mubr.msk.f32.mxu1 %vm379_vm2, %v4779_v12  ;;  %3986 = vmatprep.mubr.msk.f32.mxu0 %vm379_vm2, %v4799_v22  ;;  %v984_v12 = vrot.slane %v4635_v27, 2  ;;  %v357_v54 = vrot.slane %v4906_v8, 1 }
  0x35   : > { %v4927_v60 = vsel %vm965_vm3, %v982_v23, %v984_v12  ;;  %v4946_v12 = vld [vmem:[%s4586_s27 + $0x140] sm:$0xff] }
  0x36   : > { %3787 = vmatmul.mubr.msk.f32.gmra.mrb[14].mxu1 %vm379_vm2, %v4795_v19  ;;  %3987 = vmatmul.mubr.msk.f32.gmra.mrb[14].mxu0 %vm379_vm2, %v4819_v37  ;;  %v4892_v19 = vsel %vm296_vm1, %v347_v10, %v348_v13  ;;  %v4909_v10 = vld [vmem:[%s4586_s27 + $0x128] sm:$0xff]  ;;  %5887 = vst [vmem:[#allocation24_spill] sm:$0xff] %v4927_v60 }
  0x37   : > { %3789 = vmatprep.mubr.msk.f32.mxu1 %vm379_vm2, %v4799_v22  ;;  %4015 = vmatprep.mubr.msk.f32.mxu0 %vm379_vm2, %v4827_v47  ;;  %v4864_v22 = vld [vmem:[%s4586_s27 + $0x108] sm:$0xff]  ;;  %5884 = vst [vmem:[#allocation21_spill] sm:$0xff] %v4892_v19 }
  0x3a   : > { %3790 = vmatmul.mubr.msk.f32.gmra.mrb[16].mxu1 %vm379_vm2, %v4819_v37  ;;  %4016 = vmatmul.mubr.msk.f32.vlgmr.msra.gmra.mrb[0].mxu0 %vm379_vm2, %v4848_v63  ;;  %v350_v37 = vrot.slane %v4856_v16, 1 }
  0x3b   : > { %3792 = vmatprep.mubr.msk.f32.mxu1 %vm379_vm2, %v4851_v0  ;;  %4064 = vmatpush3.msk.msra.mxu0 %vm444_vm0, %v4651_v33  ;;  %v352_v0 = vrot.slane %v4864_v22, 1  ;;  %v987_v33 = vrot.slane %v4646_v32, 2 }
  0x3c   : > { %4018 = vmatprep.mubr.msk.f32.mxu0 %vm379_vm2, %v4859_v21  ;;  %4113 = vmatprep.subr.msk.mxu0 %vm444_vm0, %v4874_v30  ;;  %v4920_v27 = vsel %vm296_vm1, %v348_v13, %v350_v37  ;;  %v992_v13 = vrot.slane %v4686_v43, 2 }
  0x3d   : > { %5886 = vst [vmem:[#allocation23_spill] sm:$0xff] %v4920_v27  ;;  %v4938_v37 = vsel %vm965_vm3, %v986_v61, %v987_v33  ;;  %v4958_v23 = vsel %vm965_vm3, %v987_v33, %v989_v62  ;;  %v360_v61 = vrot.slane %v4935_v52, 1  ;;  %v996_v62 = vrot.slane %v4711_v50, 2 }
  0x3e   : > { %3793 = vmatmul.mubr.msk.f32.gmra.mrb[18].mxu1 %vm379_vm2, %v4881_v39  ;;  %4019 = vmatmul.mubr.msk.f32.gmra.mrb[2].mxu0 %vm379_vm2, %v4884_v48  ;;  %v4930_v39 = vsel %vm296_vm1, %v352_v0, %v353_v40  ;;  %5889 = vst [vmem:[#allocation26_spill] sm:$0xff] %v4938_v37  ;;  %v4955_v0 = vsel %vm296_vm1, %v353_v40, %v355_v20  ;;  %5891 = vst [vmem:[#allocation28_spill] sm:$0xff] %v4958_v23  ;;  %v997_v33 = vrot.slane %v4714_v51, 2  ;;  %v4978_v20 = vld [vmem:[%s4586_s27 + $0x150] sm:$0xff]  ;;  %v5040_v48 = vld [vmem:[%s4586_s27 + $0x178] sm:$0x3] }
  0x3f   : > { %3795 = vmatprep.mubr.msk.f32.mxu1 %vm379_vm2, %v4892_v19  ;;  %4021 = vmatprep.mubr.msk.f32.mxu0 %vm379_vm2, %v4901_v14  ;;  %5888 = vst [vmem:[#allocation25_spill] sm:$0xff] %v4930_v39  ;;  %v358_v19 = vrot.slane %v4909_v10, 1  ;;  %5890 = vst [vmem:[#allocation27_spill] sm:$0xff] %v4955_v0  ;;  %v4973_v40 = vsel %vm965_vm3, %v991_v41, %v992_v13  ;;  %v365_v41 = vrot.slane %v4970_v36, 1 }
  0x40   : > { %5893 = vst [vmem:[#allocation30_spill] sm:$0xff] %v4973_v40 }
  0x41   : > { %v4990_v49 = vsel %vm296_vm1, %v358_v19, %v360_v61  ;;  %v1002_v61 = vrot.slane %v4740_v59, 2 }
  0x42   : > { %3796 = vmatmul.mubr.msk.f32.gmra.mrb[20].mxu1 %vm379_vm2, %v4920_v27  ;;  %4022 = vmatmul.mubr.msk.f32.gmra.mrb[4].mxu0 %vm379_vm2, %v4927_v60  ;;  %v4964_v27 = vsel %vm296_vm1, %v357_v54, %v358_v19  ;;  %v4981_v54 = vld [vmem:[%s4586_s27 + $0x158] sm:$0xff]  ;;  %5894 = vst [vmem:[#allocation31_spill] sm:$0xff] %v4990_v49  ;;  %v5005_v60 = vld [vmem:[%s4586_s27 + $0x160] sm:$0x3]  ;;  %v5008_v19 = vsel %vm965_vm3, %v996_v62, %v997_v33 }
  0x43   : > { %3798 = vmatprep.mubr.msk.f32.mxu1 %vm379_vm2, %v4930_v39  ;;  %4024 = vmatprep.mubr.msk.f32.mxu0 %vm379_vm2, %v4938_v37  ;;  %5892 = vst [vmem:[#allocation29_spill] sm:$0xff] %v4964_v27  ;;  %v363_v39 = vrot.slane %v4946_v12, 1  ;;  %v4997_v37 = vsel %vm965_vm3, %v992_v13, %v994_v44  ;;  %v5016_v44 = vld [vmem:[%s4586_s27 + $0x170] sm:$0xff]  ;;  %v5028_v13 = vsel %vm965_vm3, %v997_v33, %v999_v34  ;;  %v370_v62 = vrot.slane %v5005_v60, 1 }
  0x44   : > { %5895 = vst [vmem:[#allocation32_spill] sm:$0xff] %v4997_v37  ;;  %5897 = vst [vmem:[#allocation34_spill] sm:$0xff] %v5016_v44  ;;  %v1006_v34 = vrot.slane %v4763_v3, 2  ;;  %v1007_v33 = vrot.slane %v4766_v7, 2 }
  0x45   : > { %5899 = vst [vmem:[#allocation36_spill] sm:$0xff] %v5028_v13 }
  0x46   : > { %3799 = vmatmul.mubr.msk.f32.gmra.mrb[22].mxu1 %vm379_vm2, %v4955_v0  ;;  %4025 = vmatmul.mubr.msk.f32.gmra.mrb[6].mxu0 %vm379_vm2, %v4958_v23  ;;  %v5000_v0 = vsel %vm296_vm1, %v362_v38, %v363_v39  ;;  %v367_v23 = vrot.slane %v4978_v20, 1  ;;  %v5025_v38 = vsel %vm296_vm1, %v363_v39, %v365_v41  ;;  %v5043_v39 = vsel %vm965_vm3, %v1001_v57, %v1002_v61 }
  0x47   : > { %3801 = vmatprep.mubr.msk.f32.mxu1 %vm379_vm2, %v4964_v27  ;;  %4027 = vmatprep.mubr.msk.f32.mxu0 %vm379_vm2, %v4973_v40  ;;  %5896 = vst [vmem:[#allocation33_spill] sm:$0xff] %v5000_v0  ;;  %v368_v27 = vrot.slane %v4981_v54, 1  ;;  %v5013_v40 = vld [vmem:[%s4586_s27 + $0x168] sm:$0xff]  ;;  %5898 = vst [vmem:[#allocation35_spill] sm:$0xff] %v5025_v38 }
  0x49   : > { %v5034_v14 = vsel %vm296_vm1, %v367_v23, %v368_v27  ;;  %v375_v23 = vrot.slane %v5040_v48, 1 }
  0x4a   : > { %3802 = vmatmul.mubr.msk.f32.gmra.mrb[24].mxu1 %vm379_vm2, %v4990_v49  ;;  %4028 = vmatmul.mubr.msk.f32.gmra.mrb[8].mxu0 %vm379_vm2, %v4997_v37  ;;  %5900 = vst [vmem:[#allocation37_spill] sm:$0xff] %v5034_v14  ;;  %v1004_v49 = vrot.slane %v4758_v2, 2  ;;  %v372_v37 = vrot.slane %v5013_v40, 1  ;;  %v5054_v2 = vsel %vm296_vm1, %v368_v27, %v370_v62  ;;  %v1012_v27 = vrot.slane %v4807_v29, 2 }
  0x4b   : > { %3804 = vmatprep.mubr.msk.f32.mxu1 %vm379_vm2, %v5000_v0  ;;  %4030 = vmatprep.mubr.msk.f32.mxu0 %vm379_vm2, %v5008_v19  ;;  %v373_v0 = vrot.slane %v5016_v44, 1  ;;  %5901 = vst [vmem:[#allocation38_spill] sm:$0xff] %v5054_v2  ;;  %v1016_v62 = vrot.slane %v4832_v53, 2 }
  0x4c   : > { %v5060_v41 = vsel %vm965_vm3, %v1002_v61, %v1004_v49  ;;  %v1014_v49 = vrot.slane %v4824_v45, 2 }
  0x4d   : > { %v5063_v57 = vsel %vm296_vm1, %v372_v37, %v373_v0  ;;  %v5078_v37 = vsel %vm296_vm1, %v373_v0, %v375_v23  ;;  %v5113_v23 = vld [vmem:[%s5789_s1 + $0xc] sm:$0xf] }
  0x4e   : > { %3805 = vmatmul.mubr.msk.f32.gmra.mrb[26].mxu1 %vm379_vm2, %v5025_v38  ;;  %4031 = vmatmul.mubr.msk.f32.gmra.mrb[10].mxu0 %vm379_vm2, %v5028_v13  ;;  %5902 = vst [vmem:[#allocation39_spill] sm:$0xff] %v5063_v57  ;;  %v1009_v38 = vrot.slane %v4784_v17, 2  ;;  %v5067_v13 = vsel %vm965_vm3, %v1006_v34, %v1007_v33  ;;  %5903 = vst [vmem:[#allocation40_spill] sm:$0xff] %v5078_v37  ;;  %v1017_v34 = vrot.slane %v4835_v55, 2 }
  0x4f   : > { %3807 = vmatprep.mubr.msk.f32.mxu1 %vm379_vm2, %v5034_v14  ;;  %4033 = vmatprep.mubr.msk.f32.mxu0 %vm379_vm2, %v5043_v39  ;;  %v1011_v14 = vrot.slane %v4804_v28, 2  ;;  %v5100_v45 = vsel %vm965_vm3, %v1012_v27, %v1014_v49 }
  0x50   : > { %v5083_v17 = vsel %vm965_vm3, %v1007_v33, %v1009_v38  ;;  %v5104_v0 = vsel %vm965_vm3, %v1016_v62, %v1017_v34  ;;  %v1021_v38 = vrot.slane %v4864_v22, 2  ;;  %v1022_v33 = vrot.slane %v4867_v24, 2 }
  0x51   : > { %v5087_v61 = vsel %vm965_vm3, %v1011_v14, %v1012_v27  ;;  %v1019_v14 = vrot.slane %v4856_v16, 2  ;;  %v1024_v27 = vrot.slane %v4898_v56, 2  ;;  %v1026_v62 = vrot.slane %v4906_v8, 2 }
  0x52   : > { %3808 = vmatmul.mubr.msk.f32.gmra.mrb[28].mxu1 %vm379_vm2, %v5054_v2  ;;  %4034 = vmatmul.mubr.msk.f32.gmra.mrb[12].mxu0 %vm379_vm2, %v5060_v41  ;;  %v5128_v49 = vsel %vm965_vm3, %v1021_v38, %v1022_v33  ;;  %v1031_v38 = vrot.slane %v4943_v46, 2  ;;  %v1042_v2 = vrot.slane %v5016_v44, 2 }
  0x53   : > { %3810 = vmatprep.mubr.msk.f32.mxu1 %vm379_vm2, %v5063_v57  ;;  %4036 = vmatprep.mubr.msk.f32.mxu0 %vm379_vm2, %v5067_v13  ;;  %v5124_v16 = vsel %vm965_vm3, %v1017_v34, %v1019_v14  ;;  %5904 = vst [vmem:[#allocation41_spill] sm:$0xff] %v5128_v49  ;;  %v5143_v56 = vsel %vm965_vm3, %v1022_v33, %v1024_v27  ;;  %v1029_v34 = vrot.slane %v4935_v52, 2  ;;  %v1034_v33 = vrot.slane %v4970_v36, 2 }
  0x54   : > { %v1037_v57 = vrot.slane %v4981_v54, 2 }
  0x56   : > { %3811 = vmatmul.mubr.msk.f32.gmra.mrb[30].mxu1 %vm379_vm2, %v5078_v37  ;;  %4037 = vmatmul.mubr.msk.f32.gmra.mrb[14].mxu0 %vm379_vm2, %v5083_v17  ;;  %v1032_v37 = vrot.slane %v4946_v12, 2 }
  0x57   : > { %3815 = vmatprep.mubr.msk.f32.mxu1 %vm379_vm2, %v4589_v4  ;;  %4039 = vmatprep.mubr.msk.f32.mxu0 %vm379_vm2, %v5087_v61 }
  0x58   : > { %v5164_v27 = vsel %vm965_vm3, %v1031_v38, %v1032_v37  ;;  %v5177_v36 = vsel %vm965_vm3, %v1032_v37, %v1034_v33  ;;  %v1041_v38 = vrot.slane %v5013_v40, 2  ;;  %v1044_v37 = vrot.slane %v5040_v48, 2 }
  0x59   : > { %5906 = vst [vmem:[#allocation43_spill] sm:$0xff] %v5164_v27  ;;  %5907 = vst [vmem:[#allocation44_spill] sm:$0xff] %v5177_v36 }
  0x5a   : > { %3816 = vmatmul.mubr.msk.f32.vlgmr.msra.gmra.mrb[0].mxu1 %vm379_vm2, %v4592_v5  ;;  %4040 = vmatmul.mubr.msk.f32.gmra.mrb[16].mxu0 %vm379_vm2, %v5100_v45  ;;  %v5204_v33 = vsel %vm965_vm3, %v1041_v38, %v1042_v2  ;;  %v5220_v48 = vsel %vm965_vm3, %v1042_v2, %v1044_v37  ;;  %v967_v38 = vrot.slane %v4592_v5, 2  ;;  %v969_v37 = vrot.slane %v4604_v11, 2  ;;  %v5914_v5 = vld [vmem:[#allocation20_spill] sm:$0xff]  ;;  %v5915_v11 = vld [vmem:[#allocation22_spill] sm:$0xff] }
  0x5b   : > { %3864 = vmatpush3.msk.msra.mxu1 %vm444_vm0, %v4661_v35  ;;  %3818 = vmatprep.mubr.msk.f32.mxu1 %vm379_vm2, %v4595_v6  ;;  %v1027_v35 = vrot.slane %v4909_v10, 2  ;;  %v5191_v6 = vld [vmem:[%s4586_s27 + $0x188] sm:$0xff]  ;;  %5910 = vst [vmem:[#allocation47_spill] sm:$0xff] %v5204_v33  ;;  %5911 = vst [vmem:[#allocation48_spill] sm:$0xff] %v5220_v48 }
  0x5c   : > { %4042 = vmatprep.mubr.msk.f32.mxu0 %vm379_vm2, %v5104_v0  ;;  %3913 = vmatprep.subr.msk.mxu1 %vm444_vm0, %v5113_v23 }
  0x5d   : > { %v5147_v14 = vsel %vm965_vm3, %v1026_v62, %v1027_v35  ;;  %v5160_v52 = vsel %vm965_vm3, %v1027_v35, %v1029_v34  ;;  %v1036_v62 = vrot.slane %v4978_v20, 2  ;;  %v1039_v35 = vrot.slane %v5005_v60, 2 }
  0x5e   : > { %3819 = vmatmul.mubr.msk.f32.gmra.mrb[2].mxu1 %vm379_vm2, %v4600_v9  ;;  %4043 = vmatmul.mubr.msk.f32.gmra.mrb[18].mxu0 %vm379_vm2, %v5124_v16  ;;  %5905 = vst [vmem:[#allocation42_spill] sm:$0xff] %v5160_v52  ;;  %v5188_v9 = vld [vmem:[%s4586_s27 + $0x180] sm:$0xff] }
  0x5f   : > { %3821 = vmatprep.mubr.msk.f32.mxu1 %vm379_vm2, %v4612_v15  ;;  %4045 = vmatprep.mubr.msk.f32.mxu0 %vm379_vm2, %v5128_v49  ;;  %v5181_v34 = vsel %vm965_vm3, %v1036_v62, %v1037_v57  ;;  %v5200_v60 = vsel %vm965_vm3, %v1037_v57, %v1039_v35  ;;  %v1912_v62 = vrot.slane %v5188_v9, 2 }
  0x60   : > { %5908 = vst [vmem:[#allocation45_spill] sm:$0xff] %v5181_v34  ;;  %5909 = vst [vmem:[#allocation46_spill] sm:$0xff] %v5200_v60 }
  0x62   : > { %3822 = vmatmul.mubr.msk.f32.gmra.mrb[4].mxu1 %vm379_vm2, %v4617_v18  ;;  %4046 = vmatmul.mubr.msk.f32.gmra.mrb[20].mxu0 %vm379_vm2, %v5143_v56 }
  0x63   : > { %3824 = vmatprep.mubr.msk.f32.mxu1 %vm379_vm2, %v4629_v25  ;;  %4048 = vmatprep.mubr.msk.f32.mxu0 %vm379_vm2, %v5147_v14 }
  0x66   : > { %3825 = vmatmul.mubr.msk.f32.gmra.mrb[6].mxu1 %vm379_vm2, %v4632_v26  ;;  %4049 = vmatmul.mubr.msk.f32.gmra.mrb[22].mxu0 %vm379_vm2, %v5160_v52  ;;  %v5209_v52 = vld [vmem:[%s4586_s27 + $0x190] sm:$0x3] }
  0x67   : > { %3827 = vmatprep.mubr.msk.f32.mxu1 %vm379_vm2, %v4643_v31  ;;  %4051 = vmatprep.mubr.msk.f32.mxu0 %vm379_vm2, %v5164_v27  ;;  %v1913_v27 = vrot.slane %v5191_v6, 2  ;;  %v1915_v57 = vrot.slane %v5209_v52, 2 }
  0x69   : > { %v5224_v35 = vsel %vm965_vm3, %v1912_v62, %v1913_v27  ;;  %v5235_v2 = vsel %vm965_vm3, %v1913_v27, %v1915_v57  ;;  %v5250_v27 = vld [vmem:[%s5789_s1 + $0x20] sm:$0xf] }
  0x6a   : > { %3828 = vmatmul.mubr.msk.f32.gmra.mrb[8].mxu1 %vm379_vm2, %v4646_v32  ;;  %4052 = vmatmul.mubr.msk.f32.gmra.mrb[24].mxu0 %vm379_vm2, %v5177_v36  ;;  %5912 = vst [vmem:[#allocation49_spill] sm:$0xff] %v5224_v35  ;;  %5913 = vst [vmem:[#allocation50_spill] sm:$0xff] %v5235_v2  ;;  %v5919_v57 = vld [vmem:[#allocation30_spill] sm:$0xff] }
  0x6b   : > { %3830 = vmatprep.mubr.msk.f32.mxu1 %vm379_vm2, %v4683_v42  ;;  %4054 = vmatprep.mubr.msk.f32.mxu0 %vm379_vm2, %v5181_v34 }
  0x6e   : > { %3831 = vmatmul.mubr.msk.f32.gmra.mrb[10].mxu1 %vm379_vm2, %v4686_v43  ;;  %4055 = vmatmul.mubr.msk.f32.gmra.mrb[26].mxu0 %vm379_vm2, %v5200_v60 }
  0x6f   : > { %3833 = vmatprep.mubr.msk.f32.mxu1 %vm379_vm2, %v4711_v50  ;;  %4057 = vmatprep.mubr.msk.f32.mxu0 %vm379_vm2, %v5204_v33 }
  0x72   : > { %3834 = vmatmul.mubr.msk.f32.gmra.mrb[12].mxu1 %vm379_vm2, %v4714_v51  ;;  %4058 = vmatmul.mubr.msk.f32.gmra.mrb[28].mxu0 %vm379_vm2, %v5220_v48 }
  0x73   : > { %3836 = vmatprep.mubr.msk.f32.mxu1 %vm379_vm2, %v4737_v58  ;;  %4060 = vmatprep.mubr.msk.f32.mxu0 %vm379_vm2, %v5224_v35  ;;  %v5924_v35 = vld [vmem:[#allocation6_spill] sm:$0xff] }
  0x76   : > { %3837 = vmatmul.mubr.msk.f32.gmra.mrb[14].mxu1 %vm379_vm2, %v4740_v59  ;;  %4061 = vmatmul.mubr.msk.f32.gmra.mrb[30].mxu0 %vm379_vm2, %v5235_v2  ;;  %v5923_v2 = vld [vmem:[#allocation5_spill] sm:$0xff] }
  0x77   : > { %3839 = vmatprep.mubr.msk.f32.mxu1 %vm379_vm2, %v4763_v3  ;;  %4065 = vmatprep.mubr.msk.f32.mxu0 %vm379_vm2, %v4612_v15 }
  0x7a   : > { %3840 = vmatmul.mubr.msk.f32.gmra.mrb[16].mxu1 %vm379_vm2, %v4766_v7  ;;  %4066 = vmatmul.mubr.msk.f32.vlgmr.msra.gmra.mrb[0].mxu0 %vm379_vm2, %v4617_v18 }
  0x7b   : > { %3842 = vmatprep.mubr.msk.f32.mxu1 %vm379_vm2, %v4804_v28  ;;  %4114 = vmatpush3.msk.msra.mxu0 %vm444_vm0, %v4874_v30  ;;  %v966_v30 = vrot.slane %v4589_v4, 2  ;;  %v970_v4 = vsel %vm965_vm3, %v967_v38, %v969_v37  ;;  %v5921_v37 = vld [vmem:[#allocation36_spill] sm:$0xff] }
  0x7c   : > { %4068 = vmatprep.mubr.msk.f32.mxu0 %vm379_vm2, %v4629_v25  ;;  %4163 = vmatprep.subr.msk.mxu0 %vm444_vm0, %v5250_v27 }
  0x7d   : > { %v968_v62 = vsel %vm965_vm3, %v966_v30, %v967_v38  ;;  %v5920_v30 = vld [vmem:[#allocation32_spill] sm:$0xff]  ;;  %v5374_v38 = vld [vmem:[%s4586_s27 + $0x198] sm:$0xff] }
  0x7e   : > { %3843 = vmatmul.mubr.msk.f32.gmra.mrb[18].mxu1 %vm379_vm2, %v4807_v29  ;;  %4069 = vmatmul.mubr.msk.f32.gmra.mrb[2].mxu0 %vm379_vm2, %v4632_v26 }
  0x7f   : > { %3845 = vmatprep.mubr.msk.f32.mxu1 %vm379_vm2, %v4832_v53  ;;  %4071 = vmatprep.mubr.msk.f32.mxu0 %vm379_vm2, %v4643_v31 }
  0x82   : > { %3846 = vmatmul.mubr.msk.f32.gmra.mrb[20].mxu1 %vm379_vm2, %v4835_v55  ;;  %4072 = vmatmul.mubr.msk.f32.gmra.mrb[4].mxu0 %vm379_vm2, %v4646_v32 }
  0x83   : > { %3848 = vmatprep.mubr.msk.f32.mxu1 %vm379_vm2, %v4864_v22  ;;  %4074 = vmatprep.mubr.msk.f32.mxu0 %vm379_vm2, %v4683_v42 }
  0x86   : > { %3849 = vmatmul.mubr.msk.f32.gmra.mrb[22].mxu1 %vm379_vm2, %v4867_v24  ;;  %4075 = vmatmul.mubr.msk.f32.gmra.mrb[6].mxu0 %vm379_vm2, %v4686_v43 }
  0x87   : > { %3851 = vmatprep.mubr.msk.f32.mxu1 %vm379_vm2, %v4906_v8  ;;  %4077 = vmatprep.mubr.msk.f32.mxu0 %vm379_vm2, %v4711_v50 }
  0x8a   : > { %3852 = vmatmul.mubr.msk.f32.gmra.mrb[24].mxu1 %vm379_vm2, %v4909_v10  ;;  %4078 = vmatmul.mubr.msk.f32.gmra.mrb[8].mxu0 %vm379_vm2, %v4714_v51 }
  0x8b   : > { %3854 = vmatprep.mubr.msk.f32.mxu1 %vm379_vm2, %v4943_v46  ;;  %4080 = vmatprep.mubr.msk.f32.mxu0 %vm379_vm2, %v4737_v58 }
  0x8e   : > { %3855 = vmatmul.mubr.msk.f32.gmra.mrb[26].mxu1 %vm379_vm2, %v4946_v12  ;;  %4081 = vmatmul.mubr.msk.f32.gmra.mrb[10].mxu0 %vm379_vm2, %v4740_v59 }
  0x8f   : > { %3857 = vmatprep.mubr.msk.f32.mxu1 %vm379_vm2, %v4978_v20  ;;  %4083 = vmatprep.mubr.msk.f32.mxu0 %vm379_vm2, %v4763_v3 }
  0x92   : > { %3858 = vmatmul.mubr.msk.f32.gmra.mrb[28].mxu1 %vm379_vm2, %v4981_v54  ;;  %4084 = vmatmul.mubr.msk.f32.gmra.mrb[12].mxu0 %vm379_vm2, %v4766_v7 }
  0x93   : > { %3860 = vmatprep.mubr.msk.f32.mxu1 %vm379_vm2, %v5013_v40  ;;  %4086 = vmatprep.mubr.msk.f32.mxu0 %vm379_vm2, %v4804_v28 }
  0x96   : > { %3861 = vmatmul.mubr.msk.f32.gmra.mrb[30].mxu1 %vm379_vm2, %v5016_v44  ;;  %4087 = vmatmul.mubr.msk.f32.gmra.mrb[14].mxu0 %vm379_vm2, %v4807_v29 }
  0x97   : > { %3865 = vmatprep.mubr.msk.f32.mxu1 %vm379_vm2, %v968_v62  ;;  %4089 = vmatprep.mubr.msk.f32.mxu0 %vm379_vm2, %v4832_v53  ;;  %v5385_v62 = vld [vmem:[%s4586_s27 + $0x1a0] sm:$0xff] }
  0x9a   : > { %3866 = vmatmul.mubr.msk.f32.vlgmr.msra.gmra.mrb[0].mxu1 %vm379_vm2, %v970_v4  ;;  %4090 = vmatmul.mubr.msk.f32.gmra.mrb[16].mxu0 %vm379_vm2, %v4835_v55  ;;  %v5922_v4 = vld [vmem:[#allocation4_spill] sm:$0xff] }
  0x9b   : > { %3914 = vmatpush3.msk.msra.mxu1 %vm444_vm0, %v5113_v23  ;;  %3868 = vmatprep.mubr.msk.f32.mxu1 %vm379_vm2, %v4827_v47  ;;  %v5916_v47 = vld [vmem:[#allocation24_spill] sm:$0xff] }
  0x9c   : > { %4092 = vmatprep.mubr.msk.f32.mxu0 %vm379_vm2, %v4864_v22  ;;  %4213 = vmatprep.subr.msk.mxu1 %vm444_vm0, %v4564_v1  ;;  %v5918_v23 = vld [vmem:[#allocation28_spill] sm:$0xff] }
  0x9e   : > { %3869 = vmatmul.mubr.msk.f32.gmra.mrb[2].mxu1 %vm379_vm2, %v4848_v63  ;;  %4093 = vmatmul.mubr.msk.f32.gmra.mrb[18].mxu0 %vm379_vm2, %v4867_v24  ;;  %v5917_v63 = vld [vmem:[#allocation26_spill] sm:$0xff] }
  0x9f   : > { %3871 = vmatprep.mubr.msk.f32.mxu1 %vm379_vm2, %v4859_v21  ;;  %4095 = vmatprep.mubr.msk.f32.mxu0 %vm379_vm2, %v4906_v8 }
  0xa2   : > { %3872 = vmatmul.mubr.msk.f32.gmra.mrb[4].mxu1 %vm379_vm2, %v5914_v5  ;;  %4096 = vmatmul.mubr.msk.f32.gmra.mrb[20].mxu0 %vm379_vm2, %v4909_v10 }
  0xa3   : > { %3874 = vmatprep.mubr.msk.f32.mxu1 %vm379_vm2, %v5915_v11  ;;  %4098 = vmatprep.mubr.msk.f32.mxu0 %vm379_vm2, %v4943_v46 }
  0xa6   : > { %3875 = vmatmul.mubr.msk.f32.gmra.mrb[6].mxu1 %vm379_vm2, %v5916_v47  ;;  %4099 = vmatmul.mubr.msk.f32.gmra.mrb[22].mxu0 %vm379_vm2, %v4946_v12 }
  0xa7   : > { %3877 = vmatprep.mubr.msk.f32.mxu1 %vm379_vm2, %v5917_v63  ;;  %4101 = vmatprep.mubr.msk.f32.mxu0 %vm379_vm2, %v4978_v20 }
  0xaa   : > { %3878 = vmatmul.mubr.msk.f32.gmra.mrb[8].mxu1 %vm379_vm2, %v5918_v23  ;;  %4102 = vmatmul.mubr.msk.f32.gmra.mrb[24].mxu0 %vm379_vm2, %v4981_v54 }
  0xab   : > { %3880 = vmatprep.mubr.msk.f32.mxu1 %vm379_vm2, %v5919_v57  ;;  %4104 = vmatprep.mubr.msk.f32.mxu0 %vm379_vm2, %v5013_v40 }
  0xae   : > { %3881 = vmatmul.mubr.msk.f32.gmra.mrb[10].mxu1 %vm379_vm2, %v5920_v30  ;;  %4105 = vmatmul.mubr.msk.f32.gmra.mrb[26].mxu0 %vm379_vm2, %v5016_v44  ;;  %v5925_v44 = vld [vmem:[#allocation7_spill] sm:$0xff] }
  0xaf   : > { %3883 = vmatprep.mubr.msk.f32.mxu1 %vm379_vm2, %v5008_v19  ;;  %4107 = vmatprep.mubr.msk.f32.mxu0 %vm379_vm2, %v5188_v9 }
  0xb2   : > { %3884 = vmatmul.mubr.msk.f32.gmra.mrb[12].mxu1 %vm379_vm2, %v5921_v37  ;;  %4108 = vmatmul.mubr.msk.f32.gmra.mrb[28].mxu0 %vm379_vm2, %v5191_v6 }
  0xb3   : > { %3886 = vmatprep.mubr.msk.f32.mxu1 %vm379_vm2, %v5043_v39  ;;  %4110 = vmatprep.mubr.msk.f32.mxu0 %vm379_vm2, %v5374_v38 }
  0xb6   : > { %3887 = vmatmul.mubr.msk.f32.gmra.mrb[14].mxu1 %vm379_vm2, %v5060_v41  ;;  %4111 = vmatmul.mubr.msk.f32.gmra.mrb[30].mxu0 %vm379_vm2, %v5385_v62 }
  0xb7   : > { %3889 = vmatprep.mubr.msk.f32.mxu1 %vm379_vm2, %v5067_v13  ;;  %4115 = vmatprep.mubr.msk.f32.mxu0 %vm379_vm2, %v5922_v4  ;;  %v5926_v4 = vld [vmem:[#allocation8_spill] sm:$0xff] }
  0xba   : > { %3890 = vmatmul.mubr.msk.f32.gmra.mrb[16].mxu1 %vm379_vm2, %v5083_v17  ;;  %4116 = vmatmul.mubr.msk.f32.vlgmr.msra.gmra.mrb[0].mxu0 %vm379_vm2, %v5923_v2  ;;  %v5927_v2 = vld [vmem:[#allocation9_spill] sm:$0xff] }
  0xbb   : > { %3892 = vmatprep.mubr.msk.f32.mxu1 %vm379_vm2, %v5087_v61  ;;  %4164 = vmatpush3.msk.msra.mxu0 %vm444_vm0, %v5250_v27  ;;  %v5930_v27 = vld [vmem:[#allocation12_spill] sm:$0xff] }
  0xbc   : > { %4118 = vmatprep.mubr.msk.f32.mxu0 %vm379_vm2, %v5924_v35  ;;  %v5928_v35 = vld [vmem:[#allocation10_spill] sm:$0xff] }
  0xbe   : > { %3893 = vmatmul.mubr.msk.f32.gmra.mrb[18].mxu1 %vm379_vm2, %v5100_v45  ;;  %4119 = vmatmul.mubr.msk.f32.gmra.mrb[2].mxu0 %vm379_vm2, %v5925_v44  ;;  %v5929_v44 = vld [vmem:[#allocation11_spill] sm:$0xff] }
  0xbf   : > { %3895 = vmatprep.mubr.msk.f32.mxu1 %vm379_vm2, %v5104_v0  ;;  %4121 = vmatprep.mubr.msk.f32.mxu0 %vm379_vm2, %v5926_v4  ;;  %v5931_v4 = vld [vmem:[#allocation42_spill] sm:$0xff] }
  0xc2   : > { %3896 = vmatmul.mubr.msk.f32.gmra.mrb[20].mxu1 %vm379_vm2, %v5124_v16  ;;  %4122 = vmatmul.mubr.msk.f32.gmra.mrb[4].mxu0 %vm379_vm2, %v5927_v2  ;;  %v5932_v2 = vld [vmem:[#allocation13_spill] sm:$0xff] }
  0xc3   : > { %3898 = vmatprep.mubr.msk.f32.mxu1 %vm379_vm2, %v5128_v49  ;;  %4124 = vmatprep.mubr.msk.f32.mxu0 %vm379_vm2, %v5928_v35  ;;  %v5933_v49 = vld [vmem:[#allocation43_spill] sm:$0xff]  ;;  %v5934_v35 = vld [vmem:[#allocation14_spill] sm:$0xff] }
  0xc6   : > { %3899 = vmatmul.mubr.msk.f32.gmra.mrb[22].mxu1 %vm379_vm2, %v5143_v56  ;;  %4125 = vmatmul.mubr.msk.f32.gmra.mrb[6].mxu0 %vm379_vm2, %v5929_v44  ;;  %v5935_v44 = vld [vmem:[#allocation15_spill] sm:$0xff] }
  0xc7   : > { %3901 = vmatprep.mubr.msk.f32.mxu1 %vm379_vm2, %v5147_v14  ;;  %4127 = vmatprep.mubr.msk.f32.mxu0 %vm379_vm2, %v5930_v27  ;;  %v5936_v27 = vld [vmem:[#allocation16_spill] sm:$0xff] }
  0xca   : > { %3902 = vmatmul.mubr.msk.f32.gmra.mrb[24].mxu1 %vm379_vm2, %v5931_v4  ;;  %4128 = vmatmul.mubr.msk.f32.gmra.mrb[8].mxu0 %vm379_vm2, %v5932_v2  ;;  %v5937_v2 = vld [vmem:[#allocation17_spill] sm:$0xff] }
  0xcb   : > { %3904 = vmatprep.mubr.msk.f32.mxu1 %vm379_vm2, %v5933_v49  ;;  %4130 = vmatprep.mubr.msk.f32.mxu0 %vm379_vm2, %v5934_v35  ;;  %v5938_v35 = vld [vmem:[#allocation18_spill] sm:$0xff] }
  0xce   : > { %3905 = vmatmul.mubr.msk.f32.gmra.mrb[26].mxu1 %vm379_vm2, %v5177_v36  ;;  %4131 = vmatmul.mubr.msk.f32.gmra.mrb[10].mxu0 %vm379_vm2, %v5935_v44  ;;  %v5939_v44 = vld [vmem:[#allocation19_spill] sm:$0xff] }
  0xcf   : > { %3907 = vmatprep.mubr.msk.f32.mxu1 %vm379_vm2, %v5181_v34  ;;  %4133 = vmatprep.mubr.msk.f32.mxu0 %vm379_vm2, %v5936_v27  ;;  %v5940_v34 = vld [vmem:[#allocation2_spill] sm:$0xff]  ;;  %v5941_v27 = vld [vmem:[#allocation21_spill] sm:$0xff]  ;;  %v5512_v36 = vld [vmem:[%s4586_s27 + $0x1a8] sm:$0x3] }
  0xd2   : > { %3908 = vmatmul.mubr.msk.f32.gmra.mrb[28].mxu1 %vm379_vm2, %v5200_v60  ;;  %4134 = vmatmul.mubr.msk.f32.gmra.mrb[12].mxu0 %vm379_vm2, %v5937_v2  ;;  %v5942_v60 = vld [vmem:[#allocation3_spill] sm:$0xff] }
  0xd3   : > { %3910 = vmatprep.mubr.msk.f32.mxu1 %vm379_vm2, %v5204_v33  ;;  %4136 = vmatprep.mubr.msk.f32.mxu0 %vm379_vm2, %v5938_v35  ;;  %v5943_v2 = vld [vmem:[#allocation23_spill] sm:$0xff]  ;;  %v5951_v33 = vld [vmem:[#allocation38_spill] sm:$0xff] }
  0xd6   : > { %3911 = vmatmul.mubr.msk.f32.gmra.mrb[30].mxu1 %vm379_vm2, %v5220_v48  ;;  %4137 = vmatmul.mubr.msk.f32.gmra.mrb[14].mxu0 %vm379_vm2, %v5939_v44  ;;  %v5944_v48 = vld [vmem:[#allocation25_spill] sm:$0xff] }
  0xd7   : > { %3915 = vmatprep.mubr.msk.f32.mxu1 %vm379_vm2, %v5940_v34  ;;  %4139 = vmatprep.mubr.msk.f32.mxu0 %vm379_vm2, %v5941_v27  ;;  %v5945_v34 = vld [vmem:[#allocation27_spill] sm:$0xff] }
  0xda   : > { %3916 = vmatmul.mubr.msk.f32.vlgmr.msra.gmra.mrb[0].mxu1 %vm379_vm2, %v5942_v60  ;;  %4140 = vmatmul.mubr.msk.f32.gmra.mrb[16].mxu0 %vm379_vm2, %v5943_v2  ;;  %v5946_v60 = vld [vmem:[#allocation29_spill] sm:$0xff] }
  0xdb   : > { %4214 = vmatpush3.msk.msra.mxu1 %vm444_vm0, %v4564_v1  ;;  %3918 = vmatprep.mubr.msk.f32.mxu1 %vm379_vm2, %v4612_v15  ;;  %v5947_v1 = vld [vmem:[#allocation31_spill] sm:$0xff]  ;;  %v5948_v15 = vld [vmem:[#allocation33_spill] sm:$0xff] }
  0xdc   : > { %4142 = vmatprep.mubr.msk.f32.mxu0 %vm379_vm2, %v5944_v48 }
  0xde   : > { %3919 = vmatmul.mubr.msk.f32.gmra.mrb[2].mxu1 %vm379_vm2, %v4617_v18  ;;  %4143 = vmatmul.mubr.msk.f32.gmra.mrb[18].mxu0 %vm379_vm2, %v5945_v34  ;;  %v5949_v18 = vld [vmem:[#allocation35_spill] sm:$0xff] }
  0xdf   : > { %3921 = vmatprep.mubr.msk.f32.mxu1 %vm379_vm2, %v4629_v25  ;;  %4145 = vmatprep.mubr.msk.f32.mxu0 %vm379_vm2, %v5946_v60  ;;  %v5950_v25 = vld [vmem:[#allocation37_spill] sm:$0xff] }
  0xe2   : > { %3922 = vmatmul.mubr.msk.f32.gmra.mrb[4].mxu1 %vm379_vm2, %v4632_v26  ;;  %4146 = vmatmul.mubr.msk.f32.gmra.mrb[20].mxu0 %vm379_vm2, %v5947_v1  ;;  %v1641_v26 = vrot.slane %v5188_v9, 1 }
  0xe3   : > { %3924 = vmatprep.mubr.msk.f32.mxu1 %vm379_vm2, %v4643_v31  ;;  %4148 = vmatprep.mubr.msk.f32.mxu0 %vm379_vm2, %v5948_v15  ;;  %v1642_v31 = vrot.slane %v5191_v6, 1 }
  0xe5   : > { %v5509_v15 = vsel %vm296_vm1, %v1641_v26, %v1642_v31 }
  0xe6   : > { %3925 = vmatmul.mubr.msk.f32.gmra.mrb[6].mxu1 %vm379_vm2, %v4646_v32  ;;  %4149 = vmatmul.mubr.msk.f32.gmra.mrb[22].mxu0 %vm379_vm2, %v5949_v18  ;;  %v5952_v32 = vld [vmem:[#allocation39_spill] sm:$0xff]  ;;  %v2453_v18 = vrot.slane %v5385_v62, 1 }
  0xe7   : > { %3927 = vmatprep.mubr.msk.f32.mxu1 %vm379_vm2, %v4683_v42  ;;  %4151 = vmatprep.mubr.msk.f32.mxu0 %vm379_vm2, %v5950_v25  ;;  %v1644_v42 = vrot.slane %v5209_v52, 1  ;;  %v2452_v25 = vrot.slane %v5374_v38, 1  ;;  %v2455_v52 = vrot.slane %v5512_v36, 1 }
  0xe9   : > { %v2454_v26 = vsel %vm296_vm1, %v2452_v25, %v2453_v18 }
  0xea   : > { %3928 = vmatmul.mubr.msk.f32.gmra.mrb[8].mxu1 %vm379_vm2, %v4686_v43  ;;  %4152 = vmatmul.mubr.msk.f32.gmra.mrb[24].mxu0 %vm379_vm2, %v5951_v33  ;;  %v5953_v43 = vld [vmem:[#allocation40_spill] sm:$0xff] }
  0xeb   : > { %3930 = vmatprep.mubr.msk.f32.mxu1 %vm379_vm2, %v4711_v50  ;;  %4154 = vmatprep.mubr.msk.f32.mxu0 %vm379_vm2, %v5952_v32  ;;  %v5523_v50 = vsel %vm296_vm1, %v1642_v31, %v1644_v42 }
  0xee   : > { %3931 = vmatmul.mubr.msk.f32.gmra.mrb[10].mxu1 %vm379_vm2, %v4714_v51  ;;  %4155 = vmatmul.mubr.msk.f32.gmra.mrb[26].mxu0 %vm379_vm2, %v5953_v43  ;;  %v2456_v51 = vsel %vm296_vm1, %v2453_v18, %v2455_v52 }
  0xef   : > { %3933 = vmatprep.mubr.msk.f32.mxu1 %vm379_vm2, %v4737_v58  ;;  %4157 = vmatprep.mubr.msk.f32.mxu0 %vm379_vm2, %v5509_v15  ;;  %v5957_v58 = vld [vmem:[#allocation33_spill] sm:$0xff] }
  0xf2   : > { %3934 = vmatmul.mubr.msk.f32.gmra.mrb[12].mxu1 %vm379_vm2, %v4740_v59  ;;  %4158 = vmatmul.mubr.msk.f32.gmra.mrb[28].mxu0 %vm379_vm2, %v5523_v50  ;;  %v5958_v59 = vld [vmem:[#allocation45_spill] sm:$0xff] }
  0xf3   : > { %3936 = vmatprep.mubr.msk.f32.mxu1 %vm379_vm2, %v4763_v3  ;;  %4160 = vmatprep.mubr.msk.f32.mxu0 %vm379_vm2, %v2454_v26  ;;  %v5959_v3 = vld [vmem:[#allocation35_spill] sm:$0xff] }
  0xf6   : > { %3937 = vmatmul.mubr.msk.f32.gmra.mrb[14].mxu1 %vm379_vm2, %v4766_v7  ;;  %4161 = vmatmul.mubr.msk.f32.gmra.mrb[30].mxu0 %vm379_vm2, %v2456_v51  ;;  %v5960_v7 = vld [vmem:[#allocation46_spill] sm:$0xff] }
  0xf7   : > { %3939 = vmatprep.mubr.msk.f32.mxu1 %vm379_vm2, %v4804_v28  ;;  %4165 = vmatprep.mubr.msk.f32.mxu0 %vm379_vm2, %v4859_v21  ;;  %v2723_v28 = vrot.slane %v5374_v38, 2  ;;  %v2726_v21 = vrot.slane %v5512_v36, 2 }
  0xfa   : > { %3940 = vmatmul.mubr.msk.f32.gmra.mrb[16].mxu1 %vm379_vm2, %v4807_v29  ;;  %4166 = vmatmul.mubr.msk.f32.vlgmr.msra.gmra.mrb[0].mxu0 %vm379_vm2, %v5914_v5  ;;  %v2724_v29 = vrot.slane %v5385_v62, 2 }
  0xfb   : > { %3942 = vmatprep.mubr.msk.f32.mxu1 %vm379_vm2, %v4832_v53  ;;  %4168 = vmatprep.mubr.msk.f32.mxu0 %vm379_vm2, %v5915_v11  ;;  %v5963_v53 = vld [vmem:[#allocation48_spill] sm:$0xff] }
  0xfe   : > { %3943 = vmatmul.mubr.msk.f32.gmra.mrb[18].mxu1 %vm379_vm2, %v4835_v55  ;;  %4169 = vmatmul.mubr.msk.f32.gmra.mrb[2].mxu0 %vm379_vm2, %v5916_v47  ;;  %v5964_v55 = vld [vmem:[#allocation49_spill] sm:$0xff] }
  0xff   : > { %3945 = vmatprep.mubr.msk.f32.mxu1 %vm379_vm2, %v4864_v22  ;;  %4171 = vmatprep.mubr.msk.f32.mxu0 %vm379_vm2, %v5917_v63  ;;  %v5962_v22 = vld [vmem:[#allocation47_spill] sm:$0xff] }
 0x102   : > { %3946 = vmatmul.mubr.msk.f32.gmra.mrb[20].mxu1 %vm379_vm2, %v4867_v24  ;;  %4172 = vmatmul.mubr.msk.f32.gmra.mrb[4].mxu0 %vm379_vm2, %v5918_v23  ;;  %v2725_v24 = vsel %vm965_vm3, %v2723_v28, %v2724_v29 }
 0x103   : > { %3948 = vmatprep.mubr.msk.f32.mxu1 %vm379_vm2, %v4906_v8  ;;  %4174 = vmatprep.mubr.msk.f32.mxu0 %vm379_vm2, %v5919_v57  ;;  %v5961_v8 = vld [vmem:[#allocation37_spill] sm:$0xff] }
 0x106   : > { %3949 = vmatmul.mubr.msk.f32.gmra.mrb[22].mxu1 %vm379_vm2, %v4909_v10  ;;  %4175 = vmatmul.mubr.msk.f32.gmra.mrb[6].mxu0 %vm379_vm2, %v5920_v30  ;;  %v5965_v10 = vld [vmem:[#allocation50_spill] sm:$0xff] }
 0x107   : > { %3951 = vmatprep.mubr.msk.f32.mxu1 %vm379_vm2, %v4943_v46  ;;  %4177 = vmatprep.mubr.msk.f32.mxu0 %vm379_vm2, %v5008_v19  ;;  %v5954_v46 = vld [vmem:[#allocation34_spill] sm:$0xff] }
 0x10a   : > { %3952 = vmatmul.mubr.msk.f32.gmra.mrb[24].mxu1 %vm379_vm2, %v4946_v12  ;;  %4178 = vmatmul.mubr.msk.f32.gmra.mrb[8].mxu0 %vm379_vm2, %v5921_v37  ;;  %v2727_v12 = vsel %vm965_vm3, %v2724_v29, %v2726_v21 }
 0x10b   : > { %3954 = vmatprep.mubr.msk.f32.mxu1 %vm379_vm2, %v4978_v20  ;;  %4180 = vmatprep.mubr.msk.f32.mxu0 %vm379_vm2, %v5043_v39 }
 0x10e   : > { %3955 = vmatmul.mubr.msk.f32.gmra.mrb[26].mxu1 %vm379_vm2, %v4981_v54  ;;  %4181 = vmatmul.mubr.msk.f32.gmra.mrb[10].mxu0 %vm379_vm2, %v5060_v41 }
 0x10f   : > { %3957 = vmatprep.mubr.msk.f32.mxu1 %vm379_vm2, %v5013_v40  ;;  %4183 = vmatprep.mubr.msk.f32.mxu0 %vm379_vm2, %v5067_v13 }
 0x112   : > { %3958 = vmatmul.mubr.msk.f32.gmra.mrb[28].mxu1 %vm379_vm2, %v5954_v46  ;;  %4184 = vmatmul.mubr.msk.f32.gmra.mrb[12].mxu0 %vm379_vm2, %v5083_v17 }
 0x113   : > { %3960 = vmatprep.mubr.msk.f32.mxu1 %vm379_vm2, %v5188_v9  ;;  %4186 = vmatprep.mubr.msk.f32.mxu0 %vm379_vm2, %v5087_v61  ;;  %v5955_v9 = vld [vmem:[#allocation41_spill] sm:$0xff] }
 0x116   : > { %3961 = vmatmul.mubr.msk.f32.gmra.mrb[30].mxu1 %vm379_vm2, %v5191_v6  ;;  %4187 = vmatmul.mubr.msk.f32.gmra.mrb[14].mxu0 %vm379_vm2, %v5100_v45  ;;  %v5956_v6 = vld [vmem:[#allocation44_spill] sm:$0xff] }
 0x117   : > { %3989 = vmatprep.mubr.msk.f32.mxu1 %vm379_vm2, %v5938_v35  ;;  %4189 = vmatprep.mubr.msk.f32.mxu0 %vm379_vm2, %v5104_v0 }
 0x11a   : > { %3990 = vmatmul.mubr.msk.f32.vlgmr.msra.gmra.mrb[16].mxu1 %vm379_vm2, %v5939_v44  ;;  %4190 = vmatmul.mubr.msk.f32.gmra.mrb[16].mxu0 %vm379_vm2, %v5124_v16 }
 0x11b   : > { %3992 = vmatprep.mubr.msk.f32.mxu1 %vm379_vm2, %v5941_v27  ;;  %4192 = vmatprep.mubr.msk.f32.mxu0 %vm379_vm2, %v5955_v9 }
 0x11e   : > { %3993 = vmatmul.mubr.msk.f32.gmra.mrb[18].mxu1 %vm379_vm2, %v5943_v2  ;;  %4193 = vmatmul.mubr.msk.f32.gmra.mrb[18].mxu0 %vm379_vm2, %v5143_v56 }
 0x11f   : > { %3995 = vmatprep.mubr.msk.f32.mxu1 %vm379_vm2, %v5944_v48  ;;  %4195 = vmatprep.mubr.msk.f32.mxu0 %vm379_vm2, %v5147_v14  ;;  %v5675_v48 = vld [vmem:[%s5790_s2] ss:$0 sm:$0xff] }
 0x122   : > { %3996 = vmatmul.mubr.msk.f32.gmra.mrb[20].mxu1 %vm379_vm2, %v5945_v34  ;;  %4196 = vmatmul.mubr.msk.f32.gmra.mrb[20].mxu0 %vm379_vm2, %v5931_v4 }
 0x123   : > { %3998 = vmatprep.mubr.msk.f32.mxu1 %vm379_vm2, %v5946_v60  ;;  %4198 = vmatprep.mubr.msk.f32.mxu0 %vm379_vm2, %v5933_v49 }
 0x126   : > { %3999 = vmatmul.mubr.msk.f32.gmra.mrb[22].mxu1 %vm379_vm2, %v5947_v1  ;;  %4199 = vmatmul.mubr.msk.f32.gmra.mrb[22].mxu0 %vm379_vm2, %v5956_v6 }
 0x127   : > { %4001 = vmatprep.mubr.msk.f32.mxu1 %vm379_vm2, %v5957_v58  ;;  %4201 = vmatprep.mubr.msk.f32.mxu0 %vm379_vm2, %v5958_v59 }
 0x12a   : > { %4002 = vmatmul.mubr.msk.f32.gmra.mrb[24].mxu1 %vm379_vm2, %v5959_v3  ;;  %4202 = vmatmul.mubr.msk.f32.gmra.mrb[24].mxu0 %vm379_vm2, %v5960_v7 }
 0x12b   : > { %4004 = vmatprep.mubr.msk.f32.mxu1 %vm379_vm2, %v5961_v8  ;;  %4204 = vmatprep.mubr.msk.f32.mxu0 %vm379_vm2, %v5962_v22 }
 0x12e   : > { %4005 = vmatmul.mubr.msk.f32.gmra.mrb[26].mxu1 %vm379_vm2, %v5951_v33  ;;  %4205 = vmatmul.mubr.msk.f32.gmra.mrb[26].mxu0 %vm379_vm2, %v5963_v53 }
 0x12f   : > { %4007 = vmatprep.mubr.msk.f32.mxu1 %vm379_vm2, %v5952_v32  ;;  %4207 = vmatprep.mubr.msk.f32.mxu0 %vm379_vm2, %v5964_v55 }
 0x132   : > { %4008 = vmatmul.mubr.msk.f32.gmra.mrb[28].mxu1 %vm379_vm2, %v5953_v43  ;;  %4208 = vmatmul.mubr.msk.f32.gmra.mrb[28].mxu0 %vm379_vm2, %v5965_v10 }
 0x133   : > { %4010 = vmatprep.mubr.msk.f32.mxu1 %vm379_vm2, %v5509_v15  ;;  %4210 = vmatprep.mubr.msk.f32.mxu0 %vm379_vm2, %v2725_v24 }
 0x136   : > { %4011 = vmatmul.mubr.msk.f32.gmra.mrb[30].mxu1 %vm379_vm2, %v5523_v50  ;;  %4211 = vmatmul.mubr.msk.f32.gmra.mrb[30].mxu0 %vm379_vm2, %v2727_v12 }
 0x1ad   : > { %v3917_v40 = vpop.f32.mrb[0].mxu1 }
 0x1ae   : > { %v1449_v20 = vpop.f32.mrb[1].mxu1 }
 0x1b1   : > { %v3920_v54 = vpop.f32.mrb[2].mxu1 }
 0x1b2   : > { %v1459_v19 = vpop.f32.mrb[3].mxu1 }
 0x1b5   : > { %v3923_v13 = vpop.f32.mrb[4].mxu1 }
 0x1b6   : > { %v1469_v39 = vpop.f32.mrb[5].mxu1 }
 0x1b9   : > { %v3926_v41 = vpop.f32.mrb[6].mxu1 }
 0x1ba   : > { %v1479_v17 = vpop.f32.mrb[7].mxu1 }
 0x1bd   : > { %v3929_v61 = vpop.f32.mrb[8].mxu1 }
 0x1be   : > { %v1489_v45 = vpop.f32.mrb[9].mxu1 }
 0x1c1   : > { %v3932_v0 = vpop.f32.mrb[10].mxu1 }
 0x1c2   : > { %v1499_v16 = vpop.f32.mrb[11].mxu1 }
 0x1c5   : > { %v3935_v49 = vpop.f32.mrb[12].mxu1 }
 0x1c6   : > { %v1509_v56 = vpop.f32.mrb[13].mxu1 }
 0x1c9   : > { %v3938_v14 = vpop.f32.mrb[14].mxu1 }
 0x1ca   : > { %v5669_v36 = vpop.f32.mrb[15].mxu1 }
 0x1cd   : > { %v4167_v33 = vpop.f32.mrb[0].mxu0 }
 0x1ce   : > { %v4215_v5 = vadd.f32 %v4167_v33, %v3917_v40  ;;  %v2803_v11 = vpop.f32.mrb[1].mxu0 }
 0x1cf   : > { %v4216_v47 = vadd.f32 %v2803_v11, %v1449_v20 }
 0x1d0   : > { %v3002_v63 = vadd.f32 %v4215_v5, %v5675_v48 }
 0x1d1   : > { %v3001_v23 = vadd.f32 %v4216_v47, %v5675_v48  ;;  %v4170_v57 = vpop.f32.mrb[2].mxu0 }
 0x1d2   : > { %3035 = vst.msk [vmem:[%s5680_s20 + $0x8] sm:$0xff] %vm3033_vm4, %v3002_v63  ;;  %v4217_v30 = vadd.f32 %v4170_v57, %v3920_v54  ;;  %v2813_v38 = vpop.f32.mrb[3].mxu0 }
 0x1d3   : > { %3034 = vst.msk [vmem:[%s5680_s20] sm:$0xff] %vm3033_vm4, %v3001_v23  ;;  %v4218_v37 = vadd.f32 %v2813_v38, %v1459_v19 }
 0x1d4   : > { %v3004_v62 = vadd.f32 %v4217_v30, %v5675_v48 }
 0x1d5   : > { %v3003_v4 = vadd.f32 %v4218_v37, %v5675_v48  ;;  %v4173_v35 = vpop.f32.mrb[4].mxu0 }
 0x1d6   : > { %3037 = vst.msk [vmem:[%s5680_s20 + $0x18] sm:$0xff] %vm3033_vm4, %v3004_v62  ;;  %v4219_v44 = vadd.f32 %v4173_v35, %v3923_v13  ;;  %v2823_v27 = vpop.f32.mrb[5].mxu0 }
 0x1d7   : > { %3036 = vst.msk [vmem:[%s5680_s20 + $0x10] sm:$0xff] %vm3033_vm4, %v3003_v4  ;;  %v4220_v2 = vadd.f32 %v2823_v27, %v1469_v39 }
 0x1d8   : > { %v3006_v34 = vadd.f32 %v4219_v44, %v5675_v48 }
 0x1d9   : > { %v3005_v60 = vadd.f32 %v4220_v2, %v5675_v48  ;;  %v4176_v1 = vpop.f32.mrb[6].mxu0 }
 0x1da   : > { %3039 = vst.msk [vmem:[%s5680_s20 + $0x28] sm:$0xff] %vm3033_vm4, %v3006_v34  ;;  %v4221_v15 = vadd.f32 %v4176_v1, %v3926_v41  ;;  %v2833_v18 = vpop.f32.mrb[7].mxu0 }
 0x1db   : > { %3038 = vst.msk [vmem:[%s5680_s20 + $0x20] sm:$0xff] %vm3033_vm4, %v3005_v60  ;;  %v4222_v25 = vadd.f32 %v2833_v18, %v1479_v17 }
 0x1dc   : > { %v3008_v31 = vadd.f32 %v4221_v15, %v5675_v48 }
 0x1dd   : > { %v3007_v32 = vadd.f32 %v4222_v25, %v5675_v48  ;;  %v4179_v42 = vpop.f32.mrb[8].mxu0 }
 0x1de   : > { %3041 = vst.msk [vmem:[%s5680_s20 + $0x38] sm:$0xff] %vm3033_vm4, %v3008_v31  ;;  %v4223_v43 = vadd.f32 %v4179_v42, %v3929_v61  ;;  %v2843_v50 = vpop.f32.mrb[9].mxu0 }
 0x1df   : > { %3040 = vst.msk [vmem:[%s5680_s20 + $0x30] sm:$0xff] %vm3033_vm4, %v3007_v32  ;;  %v4224_v52 = vadd.f32 %v2843_v50, %v1489_v45 }
 0x1e0   : > { %v3010_v26 = vadd.f32 %v4223_v43, %v5675_v48 }
 0x1e1   : > { %v3009_v51 = vadd.f32 %v4224_v52, %v5675_v48  ;;  %v4182_v46 = vpop.f32.mrb[10].mxu0 }
 0x1e2   : > { %3043 = vst.msk [vmem:[%s5680_s20 + $0x48] sm:$0xff] %vm3033_vm4, %v3010_v26  ;;  %v4225_v9 = vadd.f32 %v4182_v46, %v3932_v0  ;;  %v2853_v6 = vpop.f32.mrb[11].mxu0 }
 0x1e3   : > { %3042 = vst.msk [vmem:[%s5680_s20 + $0x40] sm:$0xff] %vm3033_vm4, %v3009_v51  ;;  %v4226_v58 = vadd.f32 %v2853_v6, %v1499_v16 }
 0x1e4   : > { %v3012_v59 = vadd.f32 %v4225_v9, %v5675_v48 }
 0x1e5   : > { %v3011_v3 = vadd.f32 %v4226_v58, %v5675_v48  ;;  %v4185_v7 = vpop.f32.mrb[12].mxu0 }
 0x1e6   : > { %3045 = vst.msk [vmem:[%s5680_s20 + $0x58] sm:$0xff] %vm3033_vm4, %v3012_v59  ;;  %v4227_v8 = vadd.f32 %v4185_v7, %v3935_v49  ;;  %v2863_v22 = vpop.f32.mrb[13].mxu0 }
 0x1e7   : > { %3044 = vst.msk [vmem:[%s5680_s20 + $0x50] sm:$0xff] %vm3033_vm4, %v3011_v3  ;;  %v4228_v28 = vadd.f32 %v2863_v22, %v1509_v56 }
 0x1e8   : > { %v3014_v29 = vadd.f32 %v4227_v8, %v5675_v48 }
 0x1e9   : > { %v3013_v53 = vadd.f32 %v4228_v28, %v5675_v48  ;;  %v4188_v55 = vpop.f32.mrb[14].mxu0 }
 0x1ea   : > { %3047 = vst.msk [vmem:[%s5680_s20 + $0x68] sm:$0xff] %vm3033_vm4, %v3014_v29  ;;  %v4229_v21 = vadd.f32 %v4188_v55, %v3938_v14  ;;  %v2873_v24 = vpop.f32.mrb[15].mxu0 }
 0x1eb   : > { %3046 = vst.msk [vmem:[%s5680_s20 + $0x60] sm:$0xff] %vm3033_vm4, %v3013_v53  ;;  %v4230_v10 = vadd.f32 %v2873_v24, %v5669_v36 }
 0x1ec   : > { %v3016_v12 = vadd.f32 %v4229_v21, %v5675_v48 }
 0x1ed   : > { %v3991_v40 = vpop.f32.mrb[16].mxu1  ;;  %v3015_v20 = vadd.f32 %v4230_v10, %v5675_v48  ;;  %v4191_v54 = vpop.f32.mrb[16].mxu0 }
 0x1ee   : > { %v1801_v19 = vpop.f32.mrb[17].mxu1  ;;  %3049 = vst.msk [vmem:[%s5680_s20 + $0x78] sm:$0xff] %vm3033_vm4, %v3016_v12  ;;  %v4231_v13 = vadd.f32 %v4191_v54, %v3991_v40  ;;  %v2883_v39 = vpop.f32.mrb[17].mxu0 }
 0x1ef   : > { %3048 = vst.msk [vmem:[%s5680_s20 + $0x70] sm:$0xff] %vm3033_vm4, %v3015_v20  ;;  %v4232_v41 = vadd.f32 %v2883_v39, %v1801_v19 }
 0x1f0   : > { %v3018_v17 = vadd.f32 %v4231_v13, %v5675_v48 }
 0x1f1   : > { %v3994_v61 = vpop.f32.mrb[18].mxu1  ;;  %v3017_v45 = vadd.f32 %v4232_v41, %v5675_v48  ;;  %v4194_v0 = vpop.f32.mrb[18].mxu0 }
 0x1f2   : > { %v1811_v16 = vpop.f32.mrb[19].mxu1  ;;  %3051 = vst.msk [vmem:[%s5680_s20 + $0x88] sm:$0xff] %vm3033_vm4, %v3018_v17  ;;  %v4233_v49 = vadd.f32 %v4194_v0, %v3994_v61  ;;  %v2893_v56 = vpop.f32.mrb[19].mxu0 }
 0x1f3   : > { %3050 = vst.msk [vmem:[%s5680_s20 + $0x80] sm:$0xff] %vm3033_vm4, %v3017_v45  ;;  %v4234_v14 = vadd.f32 %v2893_v56, %v1811_v16 }
 0x1f4   : > { %v3020_v36 = vadd.f32 %v4233_v49, %v5675_v48 }
 0x1f5   : > { %v3997_v33 = vpop.f32.mrb[20].mxu1  ;;  %v3019_v5 = vadd.f32 %v4234_v14, %v5675_v48  ;;  %v4197_v11 = vpop.f32.mrb[20].mxu0 }
 0x1f6   : > { %v1821_v47 = vpop.f32.mrb[21].mxu1  ;;  %3053 = vst.msk [vmem:[%s5680_s20 + $0x98] sm:$0xff] %vm3033_vm4, %v3020_v36  ;;  %v4235_v63 = vadd.f32 %v4197_v11, %v3997_v33  ;;  %v2903_v23 = vpop.f32.mrb[21].mxu0 }
 0x1f7   : > { %3052 = vst.msk [vmem:[%s5680_s20 + $0x90] sm:$0xff] %vm3033_vm4, %v3019_v5  ;;  %v4236_v57 = vadd.f32 %v2903_v23, %v1821_v47 }
 0x1f8   : > { %v3022_v30 = vadd.f32 %v4235_v63, %v5675_v48 }
 0x1f9   : > { %v4000_v38 = vpop.f32.mrb[22].mxu1  ;;  %v3021_v37 = vadd.f32 %v4236_v57, %v5675_v48  ;;  %v4200_v62 = vpop.f32.mrb[22].mxu0 }
 0x1fa   : > { %v1831_v4 = vpop.f32.mrb[23].mxu1  ;;  %3055 = vst.msk [vmem:[%s5680_s20 + $0xa8] sm:$0xff] %vm3033_vm4, %v3022_v30  ;;  %v4237_v35 = vadd.f32 %v4200_v62, %v4000_v38  ;;  %v2913_v44 = vpop.f32.mrb[23].mxu0 }
 0x1fb   : > { %3054 = vst.msk [vmem:[%s5680_s20 + $0xa0] sm:$0xff] %vm3033_vm4, %v3021_v37  ;;  %v4238_v27 = vadd.f32 %v2913_v44, %v1831_v4 }
 0x1fc   : > { %v3024_v2 = vadd.f32 %v4237_v35, %v5675_v48 }
 0x1fd   : > { %v4003_v34 = vpop.f32.mrb[24].mxu1  ;;  %v3023_v60 = vadd.f32 %v4238_v27, %v5675_v48  ;;  %v4203_v1 = vpop.f32.mrb[24].mxu0 }
 0x1fe   : > { %v1841_v15 = vpop.f32.mrb[25].mxu1  ;;  %3057 = vst.msk [vmem:[%s5680_s20 + $0xb8] sm:$0xff] %vm3033_vm4, %v3024_v2  ;;  %v4239_v18 = vadd.f32 %v4203_v1, %v4003_v34  ;;  %v2923_v25 = vpop.f32.mrb[25].mxu0 }
 0x1ff   : > { %3056 = vst.msk [vmem:[%s5680_s20 + $0xb0] sm:$0xff] %vm3033_vm4, %v3023_v60  ;;  %v4240_v31 = vadd.f32 %v2923_v25, %v1841_v15 }
 0x200   : > { %v3026_v32 = vadd.f32 %v4239_v18, %v5675_v48 }
 0x201   : > { %v4006_v42 = vpop.f32.mrb[26].mxu1  ;;  %v3025_v43 = vadd.f32 %v4240_v31, %v5675_v48  ;;  %v4206_v50 = vpop.f32.mrb[26].mxu0 }
 0x202   : > { %v1851_v52 = vpop.f32.mrb[27].mxu1  ;;  %3059 = vst.msk [vmem:[%s5680_s20 + $0xc8] sm:$0xff] %vm3033_vm4, %v3026_v32  ;;  %v4241_v26 = vadd.f32 %v4206_v50, %v4006_v42  ;;  %v2933_v51 = vpop.f32.mrb[27].mxu0 }
 0x203   : > { %3058 = vst.msk [vmem:[%s5680_s20 + $0xc0] sm:$0xff] %vm3033_vm4, %v3025_v43  ;;  %v4242_v46 = vadd.f32 %v2933_v51, %v1851_v52 }
 0x204   : > { %v3028_v9 = vadd.f32 %v4241_v26, %v5675_v48 }
 0x205   : > { %v4009_v6 = vpop.f32.mrb[28].mxu1  ;;  %v3027_v58 = vadd.f32 %v4242_v46, %v5675_v48  ;;  %v4209_v59 = vpop.f32.mrb[28].mxu0 }
 0x206   : > { %v1861_v3 = vpop.f32.mrb[29].mxu1  ;;  %3061 = vst.msk [vmem:[%s5680_s20 + $0xd8] sm:$0xff] %vm3033_vm4, %v3028_v9  ;;  %v4243_v7 = vadd.f32 %v4209_v59, %v4009_v6  ;;  %v2943_v8 = vpop.f32.mrb[29].mxu0 }
 0x207   : > { %3060 = vst.msk [vmem:[%s5680_s20 + $0xd0] sm:$0xff] %vm3033_vm4, %v3027_v58  ;;  %v4244_v22 = vadd.f32 %v2943_v8, %v1861_v3 }
 0x208   : > { %v3030_v28 = vadd.f32 %v4243_v7, %v5675_v48 }
 0x209   : > { %v4012_v29 = vpop.f32.mrb[30].mxu1  ;;  %v3029_v53 = vadd.f32 %v4244_v22, %v5675_v48  ;;  %v4212_v55 = vpop.f32.mrb[30].mxu0 }
 0x20a   : > { %v1871_v21 = vpop.f32.mrb[31].mxu1  ;;  %3063 = vst.msk [vmem:[%s5680_s20 + $0xe8] sm:$0xff] %vm3033_vm4, %v3030_v28  ;;  %v4245_v24 = vadd.f32 %v4212_v55, %v4012_v29  ;;  %v2953_v10 = vpop.f32.mrb[31].mxu0 }
 0x20b   : > { %3062 = vst.msk [vmem:[%s5680_s20 + $0xe0] sm:$0xff] %vm3033_vm4, %v3029_v53  ;;  %v4246_v12 = vadd.f32 %v2953_v10, %v1871_v21 }
 0x20c   : > { %v3032_v40 = vadd.f32 %v4245_v24, %v5675_v48 }
 0x20d   : > { %v3031_v20 = vadd.f32 %v4246_v12, %v5675_v48 }
 0x20e   : > { %3065 = vst.msk [vmem:[%s5680_s20 + $0xf8] sm:$0xff] %vm3033_vm4, %v3032_v40 }
 0x20f   : > { %3064 = vst.msk [vmem:[%s5680_s20 + $0xf0] sm:$0xff] %vm3033_vm4, %v3031_v20 }
 0x210 PF: > { %s13_s14 = sadd.s32 1, %s4518_s14   ;;  %s5966_s12 = smov %s4514_s13 }
 0x211   : > { %p10_p5 = scmp.ge.s32.totalorder %s13_s14, 4   ;;  %s5967_s13 = smov %s5969_s15 }
 0x213   :  { %12 = sbr.rel (!%p10_p5) target bundleno = 2 (0x2), region = 70 }

</bundles_post_ra>
